<compile_context>
chip_gen: v7x
topology: tpu7x:2x2x1
jax: 0.10.0
libtpu: 0.0.40
codegen_flags: <defaults>
</compile_context>

<pallas_src>
import functools

import numpy as np
import jax
import jax.numpy as jnp
from jax.experimental import pallas as pl
from jax.experimental.pallas import tpu as pltpu

_LANE = 128
_ONE_HOT_MAX_BP = 512   # beyond this, gather ginv[batch] in the wrapper instead

# Deterministic parameters: 3 SL(3,Z) generators + their exact integer
# inverses (torch.inverse of an SL(3,Z) matrix is its integer adjugate),
# flattened row-major to (6, 9).  All entries are in {-1, 0, +1}.
_G3 = np.array(
    [[[1, 0, 1], [0, -1, -1], [0, 1, 0]],
     [[0, 1, 0], [0, 0, 1], [1, 0, 0]],
     [[0, 1, 0], [1, 0, 0], [-1, -1, -1]]], dtype=np.float64)
_GEN_TABLE = np.concatenate(
    [_G3, np.round(np.linalg.inv(_G3))], axis=0).reshape(6, 9).astype(np.float32)


def _round_up(v, m):
    return ((v + m - 1) // m) * m


def _sample_indices(key, n, b):
    # torch.randint -> jax.random.randint (same distribution; different stream).
    return jax.random.randint(key, (n, b), 0, _GEN_TABLE.shape[0], dtype=jnp.int32)


def _matmul_rows(a, b):
    """(A @ B) for 3x3 matrices given as 9 row-major components; pure VPU."""
    out = []
    for i in range(3):
        for j in range(3):
            out.append(a[3 * i] * b[j]
                       + a[3 * i + 1] * b[3 + j]
                       + a[3 * i + 2] * b[6 + j])
    return out


def _adjugate_rows(g):
    """Adjugate of row-major 3x3 components. det == +1 here, so it IS the
    exact inverse (no division).  NOTE: exactness relies on |entries| < 2^24."""
    m00, m01, m02, m10, m11, m12, m20, m21, m22 = g
    return [m11 * m22 - m12 * m21, m02 * m21 - m01 * m22, m01 * m12 - m02 * m11,
            m12 * m20 - m10 * m22, m00 * m22 - m02 * m20, m02 * m10 - m00 * m12,
            m10 * m21 - m11 * m20, m01 * m20 - m00 * m21, m00 * m11 - m01 * m10]


def _select_all_slots(idx):
    """Generator components for ALL slots at once.

    idx: (n, T) int32.  Returns 9 arrays of shape (n, T).  The six (idx == t)
    masks are hoisted (computed once) and each component is a +/- sum of masks
    since every table entry is in {-1, 0, +1}.
    """
    masks = [(idx == t).astype(jnp.float32) for t in range(6)]
    comps = []
    for r in range(9):
        acc = None
        for t in range(6):
            c = float(_GEN_TABLE[t, r])
            if c == 0.0:
                continue
            term = masks[t] if c > 0 else -masks[t]
            acc = term if acc is None else acc + term
        if acc is None:
            acc = jnp.zeros_like(masks[0])
        comps.append(acc)
    return comps


def _compose_kernel(idx_ref, rho_ref, rho_out_ref, ginv_ref, *, e, k_dim):
    """Compose 2^e generators per batch lane, then rho' = rho @ g, ginv = adj(g)."""
    n = 1 << e
    comps = _select_all_slots(idx_ref[...])                # 9 x (n, tb)

    # Balanced tree over the slot (sublane) axis — same pairing structure as
    # torch's  M.view(2, -1, 3, 3); bmm(M[0], M[1])  loop.
    cur = n
    while cur > 1:
        half = cur // 2
        a = [c[:half] for c in comps]
        b = [c[half:cur] for c in comps]
        comps = _matmul_rows(a, b)
        cur = half
    g = [jnp.round(c) for c in comps]                      # 9 x (1, tb), integers
    m00, m01, m02, m10, m11, m12, m20, m21, m22 = g

    # rho' = rho @ g : row 3k+j = sum_i rho_row[3k+i] * g[3i+j].
    for k in range(k_dim):
        r0 = rho_ref[3 * k:3 * k + 1, :]
        r1 = rho_ref[3 * k + 1:3 * k + 2, :]
        r2 = rho_ref[3 * k + 2:3 * k + 3, :]
        rho_out_ref[3 * k:3 * k + 1, :] = r0 * m00 + r1 * m10 + r2 * m20
        rho_out_ref[3 * k + 1:3 * k + 2, :] = r0 * m01 + r1 * m11 + r2 * m21
        rho_out_ref[3 * k + 2:3 * k + 3, :] = r0 * m02 + r1 * m12 + r2 * m22

    inv = _adjugate_rows(g)                                # exact integer inverse
    for r in range(9):
        ginv_ref[r:r + 1, :] = inv[r]


def _store_x(ginvb, x_ref, x_out_ref):
    x0 = x_ref[0:1, :]
    x1 = x_ref[1:2, :]
    x2 = x_ref[2:3, :]
    for j in range(3):
        row = (ginvb[3 * j:3 * j + 1, :] * x0
               + ginvb[3 * j + 1:3 * j + 2, :] * x1
               + ginvb[3 * j + 2:3 * j + 3, :] * x2)
        x_out_ref[j:j + 1, :] = row - jnp.floor(row)       # == row % 1, no divide


def _apply_x_onehot_kernel(ginv_ref, batch_ref, x_ref, x_out_ref):
    """x' = (ginv[batch] @ x) mod 1; gather via one-hot matmul on the MXU."""
    b_ids = batch_ref[...]                                 # (1, tn) int32
    bp = ginv_ref.shape[1]
    tn = b_ids.shape[1]
    lane_b = jax.lax.broadcasted_iota(jnp.int32, (bp, tn), 0)
    onehot = (lane_b == b_ids).astype(jnp.float32)         # (Bp, tn)
    ginvb = jnp.dot(ginv_ref[...], onehot,
                    preferred_element_type=jnp.float32)    # (9, tn)
    _store_x(ginvb, x_ref, x_out_ref)


def _apply_x_gathered_kernel(ginvb_ref, x_ref, x_out_ref):
    """x' = (ginvb @ x) mod 1; ginv[batch] already gathered in the wrapper."""
    _store_x(ginvb_ref[...], x_ref, x_out_ref)


def random_slz(rho, x, batch, key, e=5, one_hot_max_bp=_ONE_HOT_MAX_BP):
    """Pallas TPU implementation of RandomSLZ.forward(rho, x, batch)."""
    B, K, _ = rho.shape
    N = x.shape[0]
    n = 1 << e

    # ---- layout plumbing: batch / points onto the lane axis, pad to 128 ----
    Bp = _round_up(max(B, 1), _LANE)
    Np = _round_up(max(N, 1), _LANE)
    # 128-lane tiles keep vreg pressure low in the compose fold (perf review)
    # and maximize grid steps so both v7x TensorCores get work.
    tb = _LANE
    tn = _LANE

    g_idx = _sample_indices(key, n, B)                                  # (n, B)
    g_idx = jnp.pad(g_idx, ((0, 0), (0, Bp - B)))                       # (n, Bp)

    rho_rows = jnp.transpose(rho.astype(jnp.float32), (1, 2, 0)).reshape(3 * K, B)
    rho_rows = jnp.pad(rho_rows, ((0, 0), (0, Bp - B)))                 # (3K, Bp)

    # ---- kernel 1: compose g, exact inverse, rho' (grid over batch lanes) ---
    rho_out_rows, ginv_rows = pl.pallas_call(
        functools.partial(_compose_kernel, e=e, k_dim=K),
        out_shape=(jax.ShapeDtypeStruct((3 * K, Bp), jnp.float32),
                   jax.ShapeDtypeStruct((9, Bp), jnp.float32)),
        grid=(Bp // tb,),
        in_specs=[pl.BlockSpec((n, tb), lambda i: (0, i)),
                  pl.BlockSpec((3 * K, tb), lambda i: (0, i))],
        out_specs=(pl.BlockSpec((3 * K, tb), lambda i: (0, i)),
                   pl.BlockSpec((9, tb), lambda i: (0, i))),
        compiler_params=pltpu.CompilerParams(
            dimension_semantics=("parallel",)),
    )(g_idx, rho_rows)

    # ---- kernel 2: x' = (ginv[batch] @ x) % 1 (grid over point lanes) -------
    x_rows = jnp.pad(x.astype(jnp.float32).T, ((0, 0), (0, Np - N)))    # (3, Np)
    batch_pad = jnp.pad(batch.astype(jnp.int32), (0, Np - N))           # (Np,)

    if Bp <= one_hot_max_bp:
        # Small batch: one-hot gather on the otherwise-idle MXU.
        x_out_rows = pl.pallas_call(
            _apply_x_onehot_kernel,
            out_shape=jax.ShapeDtypeStruct((3, Np), jnp.float32),
            grid=(Np // tn,),
            in_specs=[pl.BlockSpec((9, Bp), lambda i: (0, 0)),   # tiny, resident
                      pl.BlockSpec((1, tn), lambda i: (0, i)),
                      pl.BlockSpec((3, tn), lambda i: (0, i))],
            out_specs=pl.BlockSpec((3, tn), lambda i: (0, i)),
            compiler_params=pltpu.CompilerParams(
                dimension_semantics=("parallel",)),
        )(ginv_rows, batch_pad.reshape(1, Np), x_rows)
    else:
        # Large batch: the one-hot gather is O(Bp) VALU work per point tile;
        # a flat 36 B/point HBM gather in the wrapper is strictly cheaper.
        ginvb_rows = jnp.take(ginv_rows, batch_pad, axis=1)             # (9, Np)
        x_out_rows = pl.pallas_call(
            _apply_x_gathered_kernel,
            out_shape=jax.ShapeDtypeStruct((3, Np), jnp.float32),
            grid=(Np // tn,),
            in_specs=[pl.BlockSpec((9, tn), lambda i: (0, i)),
                      pl.BlockSpec((3, tn), lambda i: (0, i))],
            out_specs=pl.BlockSpec((3, tn), lambda i: (0, i)),
            compiler_params=pltpu.CompilerParams(
                dimension_semantics=("parallel",)),
        )(ginvb_rows, x_rows)

    rho_prime = rho_out_rows[:, :B].reshape(K, 3, B).transpose(2, 0, 1)
    x_prime = x_out_rows[:, :N].T
    return rho_prime.astype(rho.dtype), x_prime.astype(x.dtype)


def _reference(rho, x, batch, key, e=5):
    """Pure-JAX reference with the same sampling, tree order and adjugate."""
    B, K, _ = rho.shape
    n = 1 << e
    g_idx = _sample_indices(key, n, B)                     # (n, B)
    table = jnp.asarray(_GEN_TABLE)                        # (6, 9)
    sel = table[g_idx]                                     # (n, B, 9)
    comps = [sel[:, :, r] for r in range(9)]               # 9 x (n, B)
    cur = n
    while cur > 1:
        half = cur // 2
        a = [c[:half] for c in comps]
        b = [c[half:cur] for c in comps]
        comps = _matmul_rows(a, b)
        cur = half
    g = [jnp.round(c[0]) for c in comps]                   # 9 x (B,)

    rho_exp = jnp.stack(
        [jnp.stack([rho[:, k, 0] * g[j] + rho[:, k, 1] * g[3 + j] + rho[:, k, 2] * g[6 + j]
                    for j in range(3)], axis=-1)
         for k in range(K)], axis=1)                       # (B, K, 3)

    ginv = _adjugate_rows(g)
    ginv_b = [row[batch] for row in ginv]                  # 9 x (N,)
    cols = []
    for j in range(3):
        v = (ginv_b[3 * j] * x[:, 0] + ginv_b[3 * j + 1] * x[:, 1]
             + ginv_b[3 * j + 2] * x[:, 2])
        cols.append(v - jnp.floor(v))
    x_exp = jnp.stack(cols, axis=-1)                       # (N, 3)
    return rho_exp, x_exp


if __name__ == "__main__":
    key = jax.random.PRNGKey(0)
    k_rho, k_x, k_batch, k_g = jax.random.split(key, 4)

    B, K, N = 2, 3, 8
    rho = jax.random.normal(k_rho, (B, K, 3), dtype=jnp.float32)
    x = jax.random.uniform(k_x, (N, 3), dtype=jnp.float32)
    batch = jax.random.randint(k_batch, (N,), 0, B)

    fn = jax.jit(random_slz, static_argnames=("e", "one_hot_max_bp"))

    # Path 1: in-kernel one-hot gather on the MXU (small batch), e = 5.
    rho_prime, x_prime = fn(rho, x, batch, k_g, e=5)
    jax.block_until_ready((rho_prime, x_prime))

    assert rho_prime.shape == (B, K, 3)
    assert x_prime.shape == (N, 3)
    assert bool(jnp.all(jnp.isfinite(rho_prime)))
    assert bool(jnp.all((x_prime >= 0.0) & (x_prime <= 1.0)))

    rho_exp, x_exp = _reference(rho, x, batch, k_g, e=5)
    assert bool(jnp.allclose(rho_prime, rho_exp, rtol=1e-4, atol=1e-2))
    d = jnp.abs(x_prime - x_exp)
    d = jnp.minimum(d, 1.0 - d)                            # wrap-aware mod-1 distance
    assert bool(jnp.all(d < 1e-2))

    # Path 2: wrapper-side gather of ginv[batch] (large-batch code path),
    # exercised cheaply by forcing the threshold to 0 and a small e.
    rho_prime2, x_prime2 = fn(rho, x, batch, k_g, e=2, one_hot_max_bp=0)
    jax.block_until_ready((rho_prime2, x_prime2))
    rho_exp2, x_exp2 = _reference(rho, x, batch, k_g, e=2)
    assert bool(jnp.allclose(rho_prime2, rho_exp2, rtol=1e-4, atol=1e-2))
    d2 = jnp.abs(x_prime2 - x_exp2)
    d2 = jnp.minimum(d2, 1.0 - d2)
    assert bool(jnp.all(d2 < 1e-2))

    print("KERNEL_OK")
</pallas_src>

<mosaic_0001>
module attributes {stable_mosaic.version = 11 : i64} {
  func.func @_compose_kernel(%arg0: i32, %arg1: memref<32x128xi32, #tpu.memory_space<vmem>>, %arg2: memref<9x128xf32, #tpu.memory_space<vmem>>, %arg3: memref<9x128xf32, #tpu.memory_space<vmem>>, %arg4: memref<9x128xf32, #tpu.memory_space<vmem>>) attributes {dimension_semantics = [#tpu.dimension_semantics<parallel>], iteration_bounds = array<i64: 1>, scalar_prefetch = 0 : i64, scratch_operands = 0 : i64, tpu.core_type = #tpu.core_type<tc>, window_params = [{transform_indices = @transform_0, window_bounds = array<i64: 32, 128>}, {transform_indices = @transform_1, window_bounds = array<i64: 9, 128>}, {transform_indices = @transform_2, window_bounds = array<i64: 9, 128>}, {transform_indices = @transform_3, window_bounds = array<i64: 9, 128>}]} {
    %c0 = arith.constant 0 : index
    %c0_0 = arith.constant 0 : index
    %0 = vector.load %arg1[%c0, %c0_0] : memref<32x128xi32, #tpu.memory_space<vmem>>, vector<32x128xi32>
    %c0_i32 = arith.constant 0 : i32
    %1 = vector.broadcast %c0_i32 : i32 to vector<32x128xi32>
    %2 = arith.cmpi eq, %0, %1 : vector<32x128xi32>
    %3 = arith.extui %2 : vector<32x128xi1> to vector<32x128xi32>
    %4 = arith.sitofp %3 : vector<32x128xi32> to vector<32x128xf32>
    %c1_i32 = arith.constant 1 : i32
    %5 = vector.broadcast %c1_i32 : i32 to vector<32x128xi32>
    %6 = arith.cmpi eq, %0, %5 : vector<32x128xi32>
    %7 = arith.extui %6 : vector<32x128xi1> to vector<32x128xi32>
    %8 = arith.sitofp %7 : vector<32x128xi32> to vector<32x128xf32>
    %c2_i32 = arith.constant 2 : i32
    %9 = vector.broadcast %c2_i32 : i32 to vector<32x128xi32>
    %10 = arith.cmpi eq, %0, %9 : vector<32x128xi32>
    %11 = arith.extui %10 : vector<32x128xi1> to vector<32x128xi32>
    %12 = arith.sitofp %11 : vector<32x128xi32> to vector<32x128xf32>
    %c3_i32 = arith.constant 3 : i32
    %13 = vector.broadcast %c3_i32 : i32 to vector<32x128xi32>
    %14 = arith.cmpi eq, %0, %13 : vector<32x128xi32>
    %15 = arith.extui %14 : vector<32x128xi1> to vector<32x128xi32>
    %16 = arith.sitofp %15 : vector<32x128xi32> to vector<32x128xf32>
    %c4_i32 = arith.constant 4 : i32
    %17 = vector.broadcast %c4_i32 : i32 to vector<32x128xi32>
    %18 = arith.cmpi eq, %0, %17 : vector<32x128xi32>
    %19 = arith.extui %18 : vector<32x128xi1> to vector<32x128xi32>
    %20 = arith.sitofp %19 : vector<32x128xi32> to vector<32x128xf32>
    %c5_i32 = arith.constant 5 : i32
    %21 = vector.broadcast %c5_i32 : i32 to vector<32x128xi32>
    %22 = arith.cmpi eq, %0, %21 : vector<32x128xi32>
    %23 = arith.extui %22 : vector<32x128xi1> to vector<32x128xi32>
    %24 = arith.sitofp %23 : vector<32x128xi32> to vector<32x128xf32>
    %25 = arith.addf %4, %16 : vector<32x128xf32>
    %26 = arith.addf %8, %12 : vector<32x128xf32>
    %27 = arith.addf %26, %16 : vector<32x128xf32>
    %28 = arith.addf %27, %24 : vector<32x128xf32>
    %29 = arith.addf %4, %16 : vector<32x128xf32>
    %30 = arith.addf %29, %20 : vector<32x128xf32>
    %31 = arith.addf %12, %20 : vector<32x128xf32>
    %32 = arith.addf %31, %24 : vector<32x128xf32>
    %cst = arith.constant 0.000000e+00 : f32
    %33 = vector.broadcast %cst : f32 to vector<32x128xf32>
    %34 = arith.subf %33, %4 : vector<32x128xf32>
    %cst_1 = arith.constant 0.000000e+00 : f32
    %35 = vector.broadcast %cst_1 : f32 to vector<32x128xf32>
    %36 = arith.subf %35, %4 : vector<32x128xf32>
    %37 = arith.addf %36, %8 : vector<32x128xf32>
    %38 = arith.addf %37, %16 : vector<32x128xf32>
    %cst_2 = arith.constant 0.000000e+00 : f32
    %39 = vector.broadcast %cst_2 : f32 to vector<32x128xf32>
    %40 = arith.subf %39, %12 : vector<32x128xf32>
    %41 = arith.addf %8, %40 : vector<32x128xf32>
    %cst_3 = arith.constant 0.000000e+00 : f32
    %42 = vector.broadcast %cst_3 : f32 to vector<32x128xf32>
    %43 = arith.subf %42, %24 : vector<32x128xf32>
    %44 = arith.addf %41, %43 : vector<32x128xf32>
    %cst_4 = arith.constant 0.000000e+00 : f32
    %45 = vector.broadcast %cst_4 : f32 to vector<32x128xf32>
    %46 = arith.subf %45, %12 : vector<32x128xf32>
    %47 = arith.addf %4, %46 : vector<32x128xf32>
    %cst_5 = arith.constant 0.000000e+00 : f32
    %48 = vector.broadcast %cst_5 : f32 to vector<32x128xf32>
    %49 = arith.subf %48, %16 : vector<32x128xf32>
    %50 = arith.addf %47, %49 : vector<32x128xf32>
    %51 = arith.addf %50, %20 : vector<32x128xf32>
    %cst_6 = arith.constant 0.000000e+00 : f32
    %52 = vector.broadcast %cst_6 : f32 to vector<32x128xf32>
    %53 = arith.subf %52, %24 : vector<32x128xf32>
    %54 = arith.addf %51, %53 : vector<32x128xf32>
    %cst_7 = arith.constant 0.000000e+00 : f32
    %55 = vector.broadcast %cst_7 : f32 to vector<32x128xf32>
    %56 = arith.subf %55, %12 : vector<32x128xf32>
    %cst_8 = arith.constant 0.000000e+00 : f32
    %57 = vector.broadcast %cst_8 : f32 to vector<32x128xf32>
    %58 = arith.subf %57, %16 : vector<32x128xf32>
    %59 = arith.addf %56, %58 : vector<32x128xf32>
    %cst_9 = arith.constant 0.000000e+00 : f32
    %60 = vector.broadcast %cst_9 : f32 to vector<32x128xf32>
    %61 = arith.subf %60, %24 : vector<32x128xf32>
    %62 = arith.addf %59, %61 : vector<32x128xf32>
    %63 = vector.extract_strided_slice %25 {offsets = [0, 0], sizes = [16, 128], strides = [1, 1]} : vector<32x128xf32> to vector<16x128xf32>
    %64 = vector.extract_strided_slice %28 {offsets = [0, 0], sizes = [16, 128], strides = [1, 1]} : vector<32x128xf32> to vector<16x128xf32>
    %65 = vector.extract_strided_slice %30 {offsets = [0, 0], sizes = [16, 128], strides = [1, 1]} : vector<32x128xf32> to vector<16x128xf32>
    %66 = vector.extract_strided_slice %32 {offsets = [0, 0], sizes = [16, 128], strides = [1, 1]} : vector<32x128xf32> to vector<16x128xf32>
    %67 = vector.extract_strided_slice %34 {offsets = [0, 0], sizes = [16, 128], strides = [1, 1]} : vector<32x128xf32> to vector<16x128xf32>
    %68 = vector.extract_strided_slice %38 {offsets = [0, 0], sizes = [16, 128], strides = [1, 1]} : vector<32x128xf32> to vector<16x128xf32>
    %69 = vector.extract_strided_slice %44 {offsets = [0, 0], sizes = [16, 128], strides = [1, 1]} : vector<32x128xf32> to vector<16x128xf32>
    %70 = vector.extract_strided_slice %54 {offsets = [0, 0], sizes = [16, 128], strides = [1, 1]} : vector<32x128xf32> to vector<16x128xf32>
    %71 = vector.extract_strided_slice %62 {offsets = [0, 0], sizes = [16, 128], strides = [1, 1]} : vector<32x128xf32> to vector<16x128xf32>
    %72 = vector.extract_strided_slice %25 {offsets = [16, 0], sizes = [16, 128], strides = [1, 1]} : vector<32x128xf32> to vector<16x128xf32>
    %73 = vector.extract_strided_slice %28 {offsets = [16, 0], sizes = [16, 128], strides = [1, 1]} : vector<32x128xf32> to vector<16x128xf32>
    %74 = vector.extract_strided_slice %30 {offsets = [16, 0], sizes = [16, 128], strides = [1, 1]} : vector<32x128xf32> to vector<16x128xf32>
    %75 = vector.extract_strided_slice %32 {offsets = [16, 0], sizes = [16, 128], strides = [1, 1]} : vector<32x128xf32> to vector<16x128xf32>
    %76 = vector.extract_strided_slice %34 {offsets = [16, 0], sizes = [16, 128], strides = [1, 1]} : vector<32x128xf32> to vector<16x128xf32>
    %77 = vector.extract_strided_slice %38 {offsets = [16, 0], sizes = [16, 128], strides = [1, 1]} : vector<32x128xf32> to vector<16x128xf32>
    %78 = vector.extract_strided_slice %44 {offsets = [16, 0], sizes = [16, 128], strides = [1, 1]} : vector<32x128xf32> to vector<16x128xf32>
    %79 = vector.extract_strided_slice %54 {offsets = [16, 0], sizes = [16, 128], strides = [1, 1]} : vector<32x128xf32> to vector<16x128xf32>
    %80 = vector.extract_strided_slice %62 {offsets = [16, 0], sizes = [16, 128], strides = [1, 1]} : vector<32x128xf32> to vector<16x128xf32>
    %81 = arith.mulf %63, %72 : vector<16x128xf32>
    %82 = arith.mulf %64, %75 : vector<16x128xf32>
    %83 = arith.addf %81, %82 : vector<16x128xf32>
    %84 = arith.mulf %65, %78 : vector<16x128xf32>
    %85 = arith.addf %83, %84 : vector<16x128xf32>
    %86 = arith.mulf %63, %73 : vector<16x128xf32>
    %87 = arith.mulf %64, %76 : vector<16x128xf32>
    %88 = arith.addf %86, %87 : vector<16x128xf32>
    %89 = arith.mulf %65, %79 : vector<16x128xf32>
    %90 = arith.addf %88, %89 : vector<16x128xf32>
    %91 = arith.mulf %63, %74 : vector<16x128xf32>
    %92 = arith.mulf %64, %77 : vector<16x128xf32>
    %93 = arith.addf %91, %92 : vector<16x128xf32>
    %94 = arith.mulf %65, %80 : vector<16x128xf32>
    %95 = arith.addf %93, %94 : vector<16x128xf32>
    %96 = arith.mulf %66, %72 : vector<16x128xf32>
    %97 = arith.mulf %67, %75 : vector<16x128xf32>
    %98 = arith.addf %96, %97 : vector<16x128xf32>
    %99 = arith.mulf %68, %78 : vector<16x128xf32>
    %100 = arith.addf %98, %99 : vector<16x128xf32>
    %101 = arith.mulf %66, %73 : vector<16x128xf32>
    %102 = arith.mulf %67, %76 : vector<16x128xf32>
    %103 = arith.addf %101, %102 : vector<16x128xf32>
    %104 = arith.mulf %68, %79 : vector<16x128xf32>
    %105 = arith.addf %103, %104 : vector<16x128xf32>
    %106 = arith.mulf %66, %74 : vector<16x128xf32>
    %107 = arith.mulf %67, %77 : vector<16x128xf32>
    %108 = arith.addf %106, %107 : vector<16x128xf32>
    %109 = arith.mulf %68, %80 : vector<16x128xf32>
    %110 = arith.addf %108, %109 : vector<16x128xf32>
    %111 = arith.mulf %69, %72 : vector<16x128xf32>
    %112 = arith.mulf %70, %75 : vector<16x128xf32>
    %113 = arith.addf %111, %112 : vector<16x128xf32>
    %114 = arith.mulf %71, %78 : vector<16x128xf32>
    %115 = arith.addf %113, %114 : vector<16x128xf32>
    %116 = arith.mulf %69, %73 : vector<16x128xf32>
    %117 = arith.mulf %70, %76 : vector<16x128xf32>
    %118 = arith.addf %116, %117 : vector<16x128xf32>
    %119 = arith.mulf %71, %79 : vector<16x128xf32>
    %120 = arith.addf %118, %119 : vector<16x128xf32>
    %121 = arith.mulf %69, %74 : vector<16x128xf32>
    %122 = arith.mulf %70, %77 : vector<16x128xf32>
    %123 = arith.addf %121, %122 : vector<16x128xf32>
    %124 = arith.mulf %71, %80 : vector<16x128xf32>
    %125 = arith.addf %123, %124 : vector<16x128xf32>
    %126 = vector.extract_strided_slice %85 {offsets = [0, 0], sizes = [8, 128], strides = [1, 1]} : vector<16x128xf32> to vector<8x128xf32>
    %127 = vector.extract_strided_slice %90 {offsets = [0, 0], sizes = [8, 128], strides = [1, 1]} : vector<16x128xf32> to vector<8x128xf32>
    %128 = vector.extract_strided_slice %95 {offsets = [0, 0], sizes = [8, 128], strides = [1, 1]} : vector<16x128xf32> to vector<8x128xf32>
    %129 = vector.extract_strided_slice %100 {offsets = [0, 0], sizes = [8, 128], strides = [1, 1]} : vector<16x128xf32> to vector<8x128xf32>
    %130 = vector.extract_strided_slice %105 {offsets = [0, 0], sizes = [8, 128], strides = [1, 1]} : vector<16x128xf32> to vector<8x128xf32>
    %131 = vector.extract_strided_slice %110 {offsets = [0, 0], sizes = [8, 128], strides = [1, 1]} : vector<16x128xf32> to vector<8x128xf32>
    %132 = vector.extract_strided_slice %115 {offsets = [0, 0], sizes = [8, 128], strides = [1, 1]} : vector<16x128xf32> to vector<8x128xf32>
    %133 = vector.extract_strided_slice %120 {offsets = [0, 0], sizes = [8, 128], strides = [1, 1]} : vector<16x128xf32> to vector<8x128xf32>
    %134 = vector.extract_strided_slice %125 {offsets = [0, 0], sizes = [8, 128], strides = [1, 1]} : vector<16x128xf32> to vector<8x128xf32>
    %135 = vector.extract_strided_slice %85 {offsets = [8, 0], sizes = [8, 128], strides = [1, 1]} : vector<16x128xf32> to vector<8x128xf32>
    %136 = vector.extract_strided_slice %90 {offsets = [8, 0], sizes = [8, 128], strides = [1, 1]} : vector<16x128xf32> to vector<8x128xf32>
    %137 = vector.extract_strided_slice %95 {offsets = [8, 0], sizes = [8, 128], strides = [1, 1]} : vector<16x128xf32> to vector<8x128xf32>
    %138 = vector.extract_strided_slice %100 {offsets = [8, 0], sizes = [8, 128], strides = [1, 1]} : vector<16x128xf32> to vector<8x128xf32>
    %139 = vector.extract_strided_slice %105 {offsets = [8, 0], sizes = [8, 128], strides = [1, 1]} : vector<16x128xf32> to vector<8x128xf32>
    %140 = vector.extract_strided_slice %110 {offsets = [8, 0], sizes = [8, 128], strides = [1, 1]} : vector<16x128xf32> to vector<8x128xf32>
    %141 = vector.extract_strided_slice %115 {offsets = [8, 0], sizes = [8, 128], strides = [1, 1]} : vector<16x128xf32> to vector<8x128xf32>
    %142 = vector.extract_strided_slice %120 {offsets = [8, 0], sizes = [8, 128], strides = [1, 1]} : vector<16x128xf32> to vector<8x128xf32>
    %143 = vector.extract_strided_slice %125 {offsets = [8, 0], sizes = [8, 128], strides = [1, 1]} : vector<16x128xf32> to vector<8x128xf32>
    %144 = arith.mulf %126, %135 : vector<8x128xf32>
    %145 = arith.mulf %127, %138 : vector<8x128xf32>
    %146 = arith.addf %144, %145 : vector<8x128xf32>
    %147 = arith.mulf %128, %141 : vector<8x128xf32>
    %148 = arith.addf %146, %147 : vector<8x128xf32>
    %149 = arith.mulf %126, %136 : vector<8x128xf32>
    %150 = arith.mulf %127, %139 : vector<8x128xf32>
    %151 = arith.addf %149, %150 : vector<8x128xf32>
    %152 = arith.mulf %128, %142 : vector<8x128xf32>
    %153 = arith.addf %151, %152 : vector<8x128xf32>
    %154 = arith.mulf %126, %137 : vector<8x128xf32>
    %155 = arith.mulf %127, %140 : vector<8x128xf32>
    %156 = arith.addf %154, %155 : vector<8x128xf32>
    %157 = arith.mulf %128, %143 : vector<8x128xf32>
    %158 = arith.addf %156, %157 : vector<8x128xf32>
    %159 = arith.mulf %129, %135 : vector<8x128xf32>
    %160 = arith.mulf %130, %138 : vector<8x128xf32>
    %161 = arith.addf %159, %160 : vector<8x128xf32>
    %162 = arith.mulf %131, %141 : vector<8x128xf32>
    %163 = arith.addf %161, %162 : vector<8x128xf32>
    %164 = arith.mulf %129, %136 : vector<8x128xf32>
    %165 = arith.mulf %130, %139 : vector<8x128xf32>
    %166 = arith.addf %164, %165 : vector<8x128xf32>
    %167 = arith.mulf %131, %142 : vector<8x128xf32>
    %168 = arith.addf %166, %167 : vector<8x128xf32>
    %169 = arith.mulf %129, %137 : vector<8x128xf32>
    %170 = arith.mulf %130, %140 : vector<8x128xf32>
    %171 = arith.addf %169, %170 : vector<8x128xf32>
    %172 = arith.mulf %131, %143 : vector<8x128xf32>
    %173 = arith.addf %171, %172 : vector<8x128xf32>
    %174 = arith.mulf %132, %135 : vector<8x128xf32>
    %175 = arith.mulf %133, %138 : vector<8x128xf32>
    %176 = arith.addf %174, %175 : vector<8x128xf32>
    %177 = arith.mulf %134, %141 : vector<8x128xf32>
    %178 = arith.addf %176, %177 : vector<8x128xf32>
    %179 = arith.mulf %132, %136 : vector<8x128xf32>
    %180 = arith.mulf %133, %139 : vector<8x128xf32>
    %181 = arith.addf %179, %180 : vector<8x128xf32>
    %182 = arith.mulf %134, %142 : vector<8x128xf32>
    %183 = arith.addf %181, %182 : vector<8x128xf32>
    %184 = arith.mulf %132, %137 : vector<8x128xf32>
    %185 = arith.mulf %133, %140 : vector<8x128xf32>
    %186 = arith.addf %184, %185 : vector<8x128xf32>
    %187 = arith.mulf %134, %143 : vector<8x128xf32>
    %188 = arith.addf %186, %187 : vector<8x128xf32>
    %189 = vector.extract_strided_slice %148 {offsets = [0, 0], sizes = [4, 128], strides = [1, 1]} : vector<8x128xf32> to vector<4x128xf32>
    %190 = vector.extract_strided_slice %153 {offsets = [0, 0], sizes = [4, 128], strides = [1, 1]} : vector<8x128xf32> to vector<4x128xf32>
    %191 = vector.extract_strided_slice %158 {offsets = [0, 0], sizes = [4, 128], strides = [1, 1]} : vector<8x128xf32> to vector<4x128xf32>
    %192 = vector.extract_strided_slice %163 {offsets = [0, 0], sizes = [4, 128], strides = [1, 1]} : vector<8x128xf32> to vector<4x128xf32>
    %193 = vector.extract_strided_slice %168 {offsets = [0, 0], sizes = [4, 128], strides = [1, 1]} : vector<8x128xf32> to vector<4x128xf32>
    %194 = vector.extract_strided_slice %173 {offsets = [0, 0], sizes = [4, 128], strides = [1, 1]} : vector<8x128xf32> to vector<4x128xf32>
    %195 = vector.extract_strided_slice %178 {offsets = [0, 0], sizes = [4, 128], strides = [1, 1]} : vector<8x128xf32> to vector<4x128xf32>
    %196 = vector.extract_strided_slice %183 {offsets = [0, 0], sizes = [4, 128], strides = [1, 1]} : vector<8x128xf32> to vector<4x128xf32>
    %197 = vector.extract_strided_slice %188 {offsets = [0, 0], sizes = [4, 128], strides = [1, 1]} : vector<8x128xf32> to vector<4x128xf32>
    %198 = vector.extract_strided_slice %148 {offsets = [4, 0], sizes = [4, 128], strides = [1, 1]} : vector<8x128xf32> to vector<4x128xf32>
    %199 = vector.extract_strided_slice %153 {offsets = [4, 0], sizes = [4, 128], strides = [1, 1]} : vector<8x128xf32> to vector<4x128xf32>
    %200 = vector.extract_strided_slice %158 {offsets = [4, 0], sizes = [4, 128], strides = [1, 1]} : vector<8x128xf32> to vector<4x128xf32>
    %201 = vector.extract_strided_slice %163 {offsets = [4, 0], sizes = [4, 128], strides = [1, 1]} : vector<8x128xf32> to vector<4x128xf32>
    %202 = vector.extract_strided_slice %168 {offsets = [4, 0], sizes = [4, 128], strides = [1, 1]} : vector<8x128xf32> to vector<4x128xf32>
    %203 = vector.extract_strided_slice %173 {offsets = [4, 0], sizes = [4, 128], strides = [1, 1]} : vector<8x128xf32> to vector<4x128xf32>
    %204 = vector.extract_strided_slice %178 {offsets = [4, 0], sizes = [4, 128], strides = [1, 1]} : vector<8x128xf32> to vector<4x128xf32>
    %205 = vector.extract_strided_slice %183 {offsets = [4, 0], sizes = [4, 128], strides = [1, 1]} : vector<8x128xf32> to vector<4x128xf32>
    %206 = vector.extract_strided_slice %188 {offsets = [4, 0], sizes = [4, 128], strides = [1, 1]} : vector<8x128xf32> to vector<4x128xf32>
    %207 = arith.mulf %189, %198 : vector<4x128xf32>
    %208 = arith.mulf %190, %201 : vector<4x128xf32>
    %209 = arith.addf %207, %208 : vector<4x128xf32>
    %210 = arith.mulf %191, %204 : vector<4x128xf32>
    %211 = arith.addf %209, %210 : vector<4x128xf32>
    %212 = arith.mulf %189, %199 : vector<4x128xf32>
    %213 = arith.mulf %190, %202 : vector<4x128xf32>
    %214 = arith.addf %212, %213 : vector<4x128xf32>
    %215 = arith.mulf %191, %205 : vector<4x128xf32>
    %216 = arith.addf %214, %215 : vector<4x128xf32>
    %217 = arith.mulf %189, %200 : vector<4x128xf32>
    %218 = arith.mulf %190, %203 : vector<4x128xf32>
    %219 = arith.addf %217, %218 : vector<4x128xf32>
    %220 = arith.mulf %191, %206 : vector<4x128xf32>
    %221 = arith.addf %219, %220 : vector<4x128xf32>
    %222 = arith.mulf %192, %198 : vector<4x128xf32>
    %223 = arith.mulf %193, %201 : vector<4x128xf32>
    %224 = arith.addf %222, %223 : vector<4x128xf32>
    %225 = arith.mulf %194, %204 : vector<4x128xf32>
    %226 = arith.addf %224, %225 : vector<4x128xf32>
    %227 = arith.mulf %192, %199 : vector<4x128xf32>
    %228 = arith.mulf %193, %202 : vector<4x128xf32>
    %229 = arith.addf %227, %228 : vector<4x128xf32>
    %230 = arith.mulf %194, %205 : vector<4x128xf32>
    %231 = arith.addf %229, %230 : vector<4x128xf32>
    %232 = arith.mulf %192, %200 : vector<4x128xf32>
    %233 = arith.mulf %193, %203 : vector<4x128xf32>
    %234 = arith.addf %232, %233 : vector<4x128xf32>
    %235 = arith.mulf %194, %206 : vector<4x128xf32>
    %236 = arith.addf %234, %235 : vector<4x128xf32>
    %237 = arith.mulf %195, %198 : vector<4x128xf32>
    %238 = arith.mulf %196, %201 : vector<4x128xf32>
    %239 = arith.addf %237, %238 : vector<4x128xf32>
    %240 = arith.mulf %197, %204 : vector<4x128xf32>
    %241 = arith.addf %239, %240 : vector<4x128xf32>
    %242 = arith.mulf %195, %199 : vector<4x128xf32>
    %243 = arith.mulf %196, %202 : vector<4x128xf32>
    %244 = arith.addf %242, %243 : vector<4x128xf32>
    %245 = arith.mulf %197, %205 : vector<4x128xf32>
    %246 = arith.addf %244, %245 : vector<4x128xf32>
    %247 = arith.mulf %195, %200 : vector<4x128xf32>
    %248 = arith.mulf %196, %203 : vector<4x128xf32>
    %249 = arith.addf %247, %248 : vector<4x128xf32>
    %250 = arith.mulf %197, %206 : vector<4x128xf32>
    %251 = arith.addf %249, %250 : vector<4x128xf32>
    %252 = vector.extract_strided_slice %211 {offsets = [0, 0], sizes = [2, 128], strides = [1, 1]} : vector<4x128xf32> to vector<2x128xf32>
    %253 = vector.extract_strided_slice %216 {offsets = [0, 0], sizes = [2, 128], strides = [1, 1]} : vector<4x128xf32> to vector<2x128xf32>
    %254 = vector.extract_strided_slice %221 {offsets = [0, 0], sizes = [2, 128], strides = [1, 1]} : vector<4x128xf32> to vector<2x128xf32>
    %255 = vector.extract_strided_slice %226 {offsets = [0, 0], sizes = [2, 128], strides = [1, 1]} : vector<4x128xf32> to vector<2x128xf32>
    %256 = vector.extract_strided_slice %231 {offsets = [0, 0], sizes = [2, 128], strides = [1, 1]} : vector<4x128xf32> to vector<2x128xf32>
    %257 = vector.extract_strided_slice %236 {offsets = [0, 0], sizes = [2, 128], strides = [1, 1]} : vector<4x128xf32> to vector<2x128xf32>
    %258 = vector.extract_strided_slice %241 {offsets = [0, 0], sizes = [2, 128], strides = [1, 1]} : vector<4x128xf32> to vector<2x128xf32>
    %259 = vector.extract_strided_slice %246 {offsets = [0, 0], sizes = [2, 128], strides = [1, 1]} : vector<4x128xf32> to vector<2x128xf32>
    %260 = vector.extract_strided_slice %251 {offsets = [0, 0], sizes = [2, 128], strides = [1, 1]} : vector<4x128xf32> to vector<2x128xf32>
    %261 = vector.extract_strided_slice %211 {offsets = [2, 0], sizes = [2, 128], strides = [1, 1]} : vector<4x128xf32> to vector<2x128xf32>
    %262 = vector.extract_strided_slice %216 {offsets = [2, 0], sizes = [2, 128], strides = [1, 1]} : vector<4x128xf32> to vector<2x128xf32>
    %263 = vector.extract_strided_slice %221 {offsets = [2, 0], sizes = [2, 128], strides = [1, 1]} : vector<4x128xf32> to vector<2x128xf32>
    %264 = vector.extract_strided_slice %226 {offsets = [2, 0], sizes = [2, 128], strides = [1, 1]} : vector<4x128xf32> to vector<2x128xf32>
    %265 = vector.extract_strided_slice %231 {offsets = [2, 0], sizes = [2, 128], strides = [1, 1]} : vector<4x128xf32> to vector<2x128xf32>
    %266 = vector.extract_strided_slice %236 {offsets = [2, 0], sizes = [2, 128], strides = [1, 1]} : vector<4x128xf32> to vector<2x128xf32>
    %267 = vector.extract_strided_slice %241 {offsets = [2, 0], sizes = [2, 128], strides = [1, 1]} : vector<4x128xf32> to vector<2x128xf32>
    %268 = vector.extract_strided_slice %246 {offsets = [2, 0], sizes = [2, 128], strides = [1, 1]} : vector<4x128xf32> to vector<2x128xf32>
    %269 = vector.extract_strided_slice %251 {offsets = [2, 0], sizes = [2, 128], strides = [1, 1]} : vector<4x128xf32> to vector<2x128xf32>
    %270 = arith.mulf %252, %261 : vector<2x128xf32>
    %271 = arith.mulf %253, %264 : vector<2x128xf32>
    %272 = arith.addf %270, %271 : vector<2x128xf32>
    %273 = arith.mulf %254, %267 : vector<2x128xf32>
    %274 = arith.addf %272, %273 : vector<2x128xf32>
    %275 = arith.mulf %252, %262 : vector<2x128xf32>
    %276 = arith.mulf %253, %265 : vector<2x128xf32>
    %277 = arith.addf %275, %276 : vector<2x128xf32>
    %278 = arith.mulf %254, %268 : vector<2x128xf32>
    %279 = arith.addf %277, %278 : vector<2x128xf32>
    %280 = arith.mulf %252, %263 : vector<2x128xf32>
    %281 = arith.mulf %253, %266 : vector<2x128xf32>
    %282 = arith.addf %280, %281 : vector<2x128xf32>
    %283 = arith.mulf %254, %269 : vector<2x128xf32>
    %284 = arith.addf %282, %283 : vector<2x128xf32>
    %285 = arith.mulf %255, %261 : vector<2x128xf32>
    %286 = arith.mulf %256, %264 : vector<2x128xf32>
    %287 = arith.addf %285, %286 : vector<2x128xf32>
    %288 = arith.mulf %257, %267 : vector<2x128xf32>
    %289 = arith.addf %287, %288 : vector<2x128xf32>
    %290 = arith.mulf %255, %262 : vector<2x128xf32>
    %291 = arith.mulf %256, %265 : vector<2x128xf32>
    %292 = arith.addf %290, %291 : vector<2x128xf32>
    %293 = arith.mulf %257, %268 : vector<2x128xf32>
    %294 = arith.addf %292, %293 : vector<2x128xf32>
    %295 = arith.mulf %255, %263 : vector<2x128xf32>
    %296 = arith.mulf %256, %266 : vector<2x128xf32>
    %297 = arith.addf %295, %296 : vector<2x128xf32>
    %298 = arith.mulf %257, %269 : vector<2x128xf32>
    %299 = arith.addf %297, %298 : vector<2x128xf32>
    %300 = arith.mulf %258, %261 : vector<2x128xf32>
    %301 = arith.mulf %259, %264 : vector<2x128xf32>
    %302 = arith.addf %300, %301 : vector<2x128xf32>
    %303 = arith.mulf %260, %267 : vector<2x128xf32>
    %304 = arith.addf %302, %303 : vector<2x128xf32>
    %305 = arith.mulf %258, %262 : vector<2x128xf32>
    %306 = arith.mulf %259, %265 : vector<2x128xf32>
    %307 = arith.addf %305, %306 : vector<2x128xf32>
    %308 = arith.mulf %260, %268 : vector<2x128xf32>
    %309 = arith.addf %307, %308 : vector<2x128xf32>
    %310 = arith.mulf %258, %263 : vector<2x128xf32>
    %311 = arith.mulf %259, %266 : vector<2x128xf32>
    %312 = arith.addf %310, %311 : vector<2x128xf32>
    %313 = arith.mulf %260, %269 : vector<2x128xf32>
    %314 = arith.addf %312, %313 : vector<2x128xf32>
    %315 = vector.extract_strided_slice %274 {offsets = [0, 0], sizes = [1, 128], strides = [1, 1]} : vector<2x128xf32> to vector<1x128xf32>
    %316 = vector.extract_strided_slice %279 {offsets = [0, 0], sizes = [1, 128], strides = [1, 1]} : vector<2x128xf32> to vector<1x128xf32>
    %317 = vector.extract_strided_slice %284 {offsets = [0, 0], sizes = [1, 128], strides = [1, 1]} : vector<2x128xf32> to vector<1x128xf32>
    %318 = vector.extract_strided_slice %289 {offsets = [0, 0], sizes = [1, 128], strides = [1, 1]} : vector<2x128xf32> to vector<1x128xf32>
    %319 = vector.extract_strided_slice %294 {offsets = [0, 0], sizes = [1, 128], strides = [1, 1]} : vector<2x128xf32> to vector<1x128xf32>
    %320 = vector.extract_strided_slice %299 {offsets = [0, 0], sizes = [1, 128], strides = [1, 1]} : vector<2x128xf32> to vector<1x128xf32>
    %321 = vector.extract_strided_slice %304 {offsets = [0, 0], sizes = [1, 128], strides = [1, 1]} : vector<2x128xf32> to vector<1x128xf32>
    %322 = vector.extract_strided_slice %309 {offsets = [0, 0], sizes = [1, 128], strides = [1, 1]} : vector<2x128xf32> to vector<1x128xf32>
    %323 = vector.extract_strided_slice %314 {offsets = [0, 0], sizes = [1, 128], strides = [1, 1]} : vector<2x128xf32> to vector<1x128xf32>
    %324 = vector.extract_strided_slice %274 {offsets = [1, 0], sizes = [1, 128], strides = [1, 1]} : vector<2x128xf32> to vector<1x128xf32>
    %325 = vector.extract_strided_slice %279 {offsets = [1, 0], sizes = [1, 128], strides = [1, 1]} : vector<2x128xf32> to vector<1x128xf32>
    %326 = vector.extract_strided_slice %284 {offsets = [1, 0], sizes = [1, 128], strides = [1, 1]} : vector<2x128xf32> to vector<1x128xf32>
    %327 = vector.extract_strided_slice %289 {offsets = [1, 0], sizes = [1, 128], strides = [1, 1]} : vector<2x128xf32> to vector<1x128xf32>
    %328 = vector.extract_strided_slice %294 {offsets = [1, 0], sizes = [1, 128], strides = [1, 1]} : vector<2x128xf32> to vector<1x128xf32>
    %329 = vector.extract_strided_slice %299 {offsets = [1, 0], sizes = [1, 128], strides = [1, 1]} : vector<2x128xf32> to vector<1x128xf32>
    %330 = vector.extract_strided_slice %304 {offsets = [1, 0], sizes = [1, 128], strides = [1, 1]} : vector<2x128xf32> to vector<1x128xf32>
    %331 = vector.extract_strided_slice %309 {offsets = [1, 0], sizes = [1, 128], strides = [1, 1]} : vector<2x128xf32> to vector<1x128xf32>
    %332 = vector.extract_strided_slice %314 {offsets = [1, 0], sizes = [1, 128], strides = [1, 1]} : vector<2x128xf32> to vector<1x128xf32>
    %333 = arith.mulf %315, %324 : vector<1x128xf32>
    %334 = arith.mulf %316, %327 : vector<1x128xf32>
    %335 = arith.addf %333, %334 : vector<1x128xf32>
    %336 = arith.mulf %317, %330 : vector<1x128xf32>
    %337 = arith.addf %335, %336 : vector<1x128xf32>
    %338 = arith.mulf %315, %325 : vector<1x128xf32>
    %339 = arith.mulf %316, %328 : vector<1x128xf32>
    %340 = arith.addf %338, %339 : vector<1x128xf32>
    %341 = arith.mulf %317, %331 : vector<1x128xf32>
    %342 = arith.addf %340, %341 : vector<1x128xf32>
    %343 = arith.mulf %315, %326 : vector<1x128xf32>
    %344 = arith.mulf %316, %329 : vector<1x128xf32>
    %345 = arith.addf %343, %344 : vector<1x128xf32>
    %346 = arith.mulf %317, %332 : vector<1x128xf32>
    %347 = arith.addf %345, %346 : vector<1x128xf32>
    %348 = arith.mulf %318, %324 : vector<1x128xf32>
    %349 = arith.mulf %319, %327 : vector<1x128xf32>
    %350 = arith.addf %348, %349 : vector<1x128xf32>
    %351 = arith.mulf %320, %330 : vector<1x128xf32>
    %352 = arith.addf %350, %351 : vector<1x128xf32>
    %353 = arith.mulf %318, %325 : vector<1x128xf32>
    %354 = arith.mulf %319, %328 : vector<1x128xf32>
    %355 = arith.addf %353, %354 : vector<1x128xf32>
    %356 = arith.mulf %320, %331 : vector<1x128xf32>
    %357 = arith.addf %355, %356 : vector<1x128xf32>
    %358 = arith.mulf %318, %326 : vector<1x128xf32>
    %359 = arith.mulf %319, %329 : vector<1x128xf32>
    %360 = arith.addf %358, %359 : vector<1x128xf32>
    %361 = arith.mulf %320, %332 : vector<1x128xf32>
    %362 = arith.addf %360, %361 : vector<1x128xf32>
    %363 = arith.mulf %321, %324 : vector<1x128xf32>
    %364 = arith.mulf %322, %327 : vector<1x128xf32>
    %365 = arith.addf %363, %364 : vector<1x128xf32>
    %366 = arith.mulf %323, %330 : vector<1x128xf32>
    %367 = arith.addf %365, %366 : vector<1x128xf32>
    %368 = arith.mulf %321, %325 : vector<1x128xf32>
    %369 = arith.mulf %322, %328 : vector<1x128xf32>
    %370 = arith.addf %368, %369 : vector<1x128xf32>
    %371 = arith.mulf %323, %331 : vector<1x128xf32>
    %372 = arith.addf %370, %371 : vector<1x128xf32>
    %373 = arith.mulf %321, %326 : vector<1x128xf32>
    %374 = arith.mulf %322, %329 : vector<1x128xf32>
    %375 = arith.addf %373, %374 : vector<1x128xf32>
    %376 = arith.mulf %323, %332 : vector<1x128xf32>
    %377 = arith.addf %375, %376 : vector<1x128xf32>
    %378 = math.roundeven %337 : vector<1x128xf32>
    %379 = math.roundeven %342 : vector<1x128xf32>
    %380 = math.roundeven %347 : vector<1x128xf32>
    %381 = math.roundeven %352 : vector<1x128xf32>
    %382 = math.roundeven %357 : vector<1x128xf32>
    %383 = math.roundeven %362 : vector<1x128xf32>
    %384 = math.roundeven %367 : vector<1x128xf32>
    %385 = math.roundeven %372 : vector<1x128xf32>
    %386 = math.roundeven %377 : vector<1x128xf32>
    %c0_10 = arith.constant 0 : index
    %c0_11 = arith.constant 0 : index
    %387 = vector.load %arg2[%c0_10, %c0_11] : memref<9x128xf32, #tpu.memory_space<vmem>>, vector<1x128xf32>
    %c1 = arith.constant 1 : index
    %c0_12 = arith.constant 0 : index
    %388 = vector.load %arg2[%c1, %c0_12] : memref<9x128xf32, #tpu.memory_space<vmem>>, vector<1x128xf32>
    %c2 = arith.constant 2 : index
    %c0_13 = arith.constant 0 : index
    %389 = vector.load %arg2[%c2, %c0_13] : memref<9x128xf32, #tpu.memory_space<vmem>>, vector<1x128xf32>
    %390 = arith.mulf %387, %378 : vector<1x128xf32>
    %391 = arith.mulf %388, %381 : vector<1x128xf32>
    %392 = arith.addf %390, %391 : vector<1x128xf32>
    %393 = arith.mulf %389, %384 : vector<1x128xf32>
    %394 = arith.addf %392, %393 : vector<1x128xf32>
    %c0_14 = arith.constant 0 : index
    %c0_15 = arith.constant 0 : index
    %395 = vector.load %arg3[%c0_14, %c0_15] : memref<9x128xf32, #tpu.memory_space<vmem>>, vector<1x128xf32>
    tpu.vector_store %arg3[%c0_14, %c0_15], %394 {strides = array<i32>} : memref<9x128xf32, #tpu.memory_space<vmem>>, vector<1x128xf32>,
    %396 = arith.mulf %387, %379 : vector<1x128xf32>
    %397 = arith.mulf %388, %382 : vector<1x128xf32>
    %398 = arith.addf %396, %397 : vector<1x128xf32>
    %399 = arith.mulf %389, %385 : vector<1x128xf32>
    %400 = arith.addf %398, %399 : vector<1x128xf32>
    %c1_16 = arith.constant 1 : index
    %c0_17 = arith.constant 0 : index
    %401 = vector.load %arg3[%c1_16, %c0_17] : memref<9x128xf32, #tpu.memory_space<vmem>>, vector<1x128xf32>
    tpu.vector_store %arg3[%c1_16, %c0_17], %400 {strides = array<i32>} : memref<9x128xf32, #tpu.memory_space<vmem>>, vector<1x128xf32>,
    %402 = arith.mulf %387, %380 : vector<1x128xf32>
    %403 = arith.mulf %388, %383 : vector<1x128xf32>
    %404 = arith.addf %402, %403 : vector<1x128xf32>
    %405 = arith.mulf %389, %386 : vector<1x128xf32>
    %406 = arith.addf %404, %405 : vector<1x128xf32>
    %c2_18 = arith.constant 2 : index
    %c0_19 = arith.constant 0 : index
    %407 = vector.load %arg3[%c2_18, %c0_19] : memref<9x128xf32, #tpu.memory_space<vmem>>, vector<1x128xf32>
    tpu.vector_store %arg3[%c2_18, %c0_19], %406 {strides = array<i32>} : memref<9x128xf32, #tpu.memory_space<vmem>>, vector<1x128xf32>,
    %c3 = arith.constant 3 : index
    %c0_20 = arith.constant 0 : index
    %408 = vector.load %arg2[%c3, %c0_20] : memref<9x128xf32, #tpu.memory_space<vmem>>, vector<1x128xf32>
    %c4 = arith.constant 4 : index
    %c0_21 = arith.constant 0 : index
    %409 = vector.load %arg2[%c4, %c0_21] : memref<9x128xf32, #tpu.memory_space<vmem>>, vector<1x128xf32>
    %c5 = arith.constant 5 : index
    %c0_22 = arith.constant 0 : index
    %410 = vector.load %arg2[%c5, %c0_22] : memref<9x128xf32, #tpu.memory_space<vmem>>, vector<1x128xf32>
    %411 = arith.mulf %408, %378 : vector<1x128xf32>
    %412 = arith.mulf %409, %381 : vector<1x128xf32>
    %413 = arith.addf %411, %412 : vector<1x128xf32>
    %414 = arith.mulf %410, %384 : vector<1x128xf32>
    %415 = arith.addf %413, %414 : vector<1x128xf32>
    %c3_23 = arith.constant 3 : index
    %c0_24 = arith.constant 0 : index
    %416 = vector.load %arg3[%c3_23, %c0_24] : memref<9x128xf32, #tpu.memory_space<vmem>>, vector<1x128xf32>
    tpu.vector_store %arg3[%c3_23, %c0_24], %415 {strides = array<i32>} : memref<9x128xf32, #tpu.memory_space<vmem>>, vector<1x128xf32>,
    %417 = arith.mulf %408, %379 : vector<1x128xf32>
    %418 = arith.mulf %409, %382 : vector<1x128xf32>
    %419 = arith.addf %417, %418 : vector<1x128xf32>
    %420 = arith.mulf %410, %385 : vector<1x128xf32>
    %421 = arith.addf %419, %420 : vector<1x128xf32>
    %c4_25 = arith.constant 4 : index
    %c0_26 = arith.constant 0 : index
    %422 = vector.load %arg3[%c4_25, %c0_26] : memref<9x128xf32, #tpu.memory_space<vmem>>, vector<1x128xf32>
    tpu.vector_store %arg3[%c4_25, %c0_26], %421 {strides = array<i32>} : memref<9x128xf32, #tpu.memory_space<vmem>>, vector<1x128xf32>,
    %423 = arith.mulf %408, %380 : vector<1x128xf32>
    %424 = arith.mulf %409, %383 : vector<1x128xf32>
    %425 = arith.addf %423, %424 : vector<1x128xf32>
    %426 = arith.mulf %410, %386 : vector<1x128xf32>
    %427 = arith.addf %425, %426 : vector<1x128xf32>
    %c5_27 = arith.constant 5 : index
    %c0_28 = arith.constant 0 : index
    %428 = vector.load %arg3[%c5_27, %c0_28] : memref<9x128xf32, #tpu.memory_space<vmem>>, vector<1x128xf32>
    tpu.vector_store %arg3[%c5_27, %c0_28], %427 {strides = array<i32>} : memref<9x128xf32, #tpu.memory_space<vmem>>, vector<1x128xf32>,
    %c6 = arith.constant 6 : index
    %c0_29 = arith.constant 0 : index
    %429 = vector.load %arg2[%c6, %c0_29] : memref<9x128xf32, #tpu.memory_space<vmem>>, vector<1x128xf32>
    %c7 = arith.constant 7 : index
    %c0_30 = arith.constant 0 : index
    %430 = vector.load %arg2[%c7, %c0_30] : memref<9x128xf32, #tpu.memory_space<vmem>>, vector<1x128xf32>
    %c8 = arith.constant 8 : index
    %c0_31 = arith.constant 0 : index
    %431 = vector.load %arg2[%c8, %c0_31] : memref<9x128xf32, #tpu.memory_space<vmem>>, vector<1x128xf32>
    %432 = arith.mulf %429, %378 : vector<1x128xf32>
    %433 = arith.mulf %430, %381 : vector<1x128xf32>
    %434 = arith.addf %432, %433 : vector<1x128xf32>
    %435 = arith.mulf %431, %384 : vector<1x128xf32>
    %436 = arith.addf %434, %435 : vector<1x128xf32>
    %c6_32 = arith.constant 6 : index
    %c0_33 = arith.constant 0 : index
    %437 = vector.load %arg3[%c6_32, %c0_33] : memref<9x128xf32, #tpu.memory_space<vmem>>, vector<1x128xf32>
    tpu.vector_store %arg3[%c6_32, %c0_33], %436 {strides = array<i32>} : memref<9x128xf32, #tpu.memory_space<vmem>>, vector<1x128xf32>,
    %438 = arith.mulf %429, %379 : vector<1x128xf32>
    %439 = arith.mulf %430, %382 : vector<1x128xf32>
    %440 = arith.addf %438, %439 : vector<1x128xf32>
    %441 = arith.mulf %431, %385 : vector<1x128xf32>
    %442 = arith.addf %440, %441 : vector<1x128xf32>
    %c7_34 = arith.constant 7 : index
    %c0_35 = arith.constant 0 : index
    %443 = vector.load %arg3[%c7_34, %c0_35] : memref<9x128xf32, #tpu.memory_space<vmem>>, vector<1x128xf32>
    tpu.vector_store %arg3[%c7_34, %c0_35], %442 {strides = array<i32>} : memref<9x128xf32, #tpu.memory_space<vmem>>, vector<1x128xf32>,
    %444 = arith.mulf %429, %380 : vector<1x128xf32>
    %445 = arith.mulf %430, %383 : vector<1x128xf32>
    %446 = arith.addf %444, %445 : vector<1x128xf32>
    %447 = arith.mulf %431, %386 : vector<1x128xf32>
    %448 = arith.addf %446, %447 : vector<1x128xf32>
    %c8_36 = arith.constant 8 : index
    %c0_37 = arith.constant 0 : index
    %449 = vector.load %arg3[%c8_36, %c0_37] : memref<9x128xf32, #tpu.memory_space<vmem>>, vector<1x128xf32>
    tpu.vector_store %arg3[%c8_36, %c0_37], %448 {strides = array<i32>} : memref<9x128xf32, #tpu.memory_space<vmem>>, vector<1x128xf32>,
    %450 = arith.mulf %382, %386 : vector<1x128xf32>
    %451 = arith.mulf %383, %385 : vector<1x128xf32>
    %452 = arith.subf %450, %451 : vector<1x128xf32>
    %453 = arith.mulf %380, %385 : vector<1x128xf32>
    %454 = arith.mulf %379, %386 : vector<1x128xf32>
    %455 = arith.subf %453, %454 : vector<1x128xf32>
    %456 = arith.mulf %379, %383 : vector<1x128xf32>
    %457 = arith.mulf %380, %382 : vector<1x128xf32>
    %458 = arith.subf %456, %457 : vector<1x128xf32>
    %459 = arith.mulf %383, %384 : vector<1x128xf32>
    %460 = arith.mulf %381, %386 : vector<1x128xf32>
    %461 = arith.subf %459, %460 : vector<1x128xf32>
    %462 = arith.mulf %378, %386 : vector<1x128xf32>
    %463 = arith.mulf %380, %384 : vector<1x128xf32>
    %464 = arith.subf %462, %463 : vector<1x128xf32>
    %465 = arith.mulf %380, %381 : vector<1x128xf32>
    %466 = arith.mulf %378, %383 : vector<1x128xf32>
    %467 = arith.subf %465, %466 : vector<1x128xf32>
    %468 = arith.mulf %381, %385 : vector<1x128xf32>
    %469 = arith.mulf %382, %384 : vector<1x128xf32>
    %470 = arith.subf %468, %469 : vector<1x128xf32>
    %471 = arith.mulf %379, %384 : vector<1x128xf32>
    %472 = arith.mulf %378, %385 : vector<1x128xf32>
    %473 = arith.subf %471, %472 : vector<1x128xf32>
    %474 = arith.mulf %378, %382 : vector<1x128xf32>
    %475 = arith.mulf %379, %381 : vector<1x128xf32>
    %476 = arith.subf %474, %475 : vector<1x128xf32>
    %c0_38 = arith.constant 0 : index
    %c0_39 = arith.constant 0 : index
    %477 = vector.load %arg4[%c0_38, %c0_39] : memref<9x128xf32, #tpu.memory_space<vmem>>, vector<1x128xf32>
    tpu.vector_store %arg4[%c0_38, %c0_39], %452 {strides = array<i32>} : memref<9x128xf32, #tpu.memory_space<vmem>>, vector<1x128xf32>,
    %c1_40 = arith.constant 1 : index
    %c0_41 = arith.constant 0 : index
    %478 = vector.load %arg4[%c1_40, %c0_41] : memref<9x128xf32, #tpu.memory_space<vmem>>, vector<1x128xf32>
    tpu.vector_store %arg4[%c1_40, %c0_41], %455 {strides = array<i32>} : memref<9x128xf32, #tpu.memory_space<vmem>>, vector<1x128xf32>,
    %c2_42 = arith.constant 2 : index
    %c0_43 = arith.constant 0 : index
    %479 = vector.load %arg4[%c2_42, %c0_43] : memref<9x128xf32, #tpu.memory_space<vmem>>, vector<1x128xf32>
    tpu.vector_store %arg4[%c2_42, %c0_43], %458 {strides = array<i32>} : memref<9x128xf32, #tpu.memory_space<vmem>>, vector<1x128xf32>,
    %c3_44 = arith.constant 3 : index
    %c0_45 = arith.constant 0 : index
    %480 = vector.load %arg4[%c3_44, %c0_45] : memref<9x128xf32, #tpu.memory_space<vmem>>, vector<1x128xf32>
    tpu.vector_store %arg4[%c3_44, %c0_45], %461 {strides = array<i32>} : memref<9x128xf32, #tpu.memory_space<vmem>>, vector<1x128xf32>,
    %c4_46 = arith.constant 4 : index
    %c0_47 = arith.constant 0 : index
    %481 = vector.load %arg4[%c4_46, %c0_47] : memref<9x128xf32, #tpu.memory_space<vmem>>, vector<1x128xf32>
    tpu.vector_store %arg4[%c4_46, %c0_47], %464 {strides = array<i32>} : memref<9x128xf32, #tpu.memory_space<vmem>>, vector<1x128xf32>,
    %c5_48 = arith.constant 5 : index
    %c0_49 = arith.constant 0 : index
    %482 = vector.load %arg4[%c5_48, %c0_49] : memref<9x128xf32, #tpu.memory_space<vmem>>, vector<1x128xf32>
    tpu.vector_store %arg4[%c5_48, %c0_49], %467 {strides = array<i32>} : memref<9x128xf32, #tpu.memory_space<vmem>>, vector<1x128xf32>,
    %c6_50 = arith.constant 6 : index
    %c0_51 = arith.constant 0 : index
    %483 = vector.load %arg4[%c6_50, %c0_51] : memref<9x128xf32, #tpu.memory_space<vmem>>, vector<1x128xf32>
    tpu.vector_store %arg4[%c6_50, %c0_51], %470 {strides = array<i32>} : memref<9x128xf32, #tpu.memory_space<vmem>>, vector<1x128xf32>,
    %c7_52 = arith.constant 7 : index
    %c0_53 = arith.constant 0 : index
    %484 = vector.load %arg4[%c7_52, %c0_53] : memref<9x128xf32, #tpu.memory_space<vmem>>, vector<1x128xf32>
    tpu.vector_store %arg4[%c7_52, %c0_53], %473 {strides = array<i32>} : memref<9x128xf32, #tpu.memory_space<vmem>>, vector<1x128xf32>,
    %c8_54 = arith.constant 8 : index
    %c0_55 = arith.constant 0 : index
    %485 = vector.load %arg4[%c8_54, %c0_55] : memref<9x128xf32, #tpu.memory_space<vmem>>, vector<1x128xf32>
    tpu.vector_store %arg4[%c8_54, %c0_55], %476 {strides = array<i32>} : memref<9x128xf32, #tpu.memory_space<vmem>>, vector<1x128xf32>,
    return
  }
  func.func @transform_0(%arg0: i32) -> (i32, i32) {
    %c0_i32 = arith.constant 0 : i32
    %c0_i32_0 = arith.constant 0 : i32
    return %c0_i32, %arg0 : i32, i32
  }
  func.func @transform_1(%arg0: i32) -> (i32, i32) {
    %c0_i32 = arith.constant 0 : i32
    %c0_i32_0 = arith.constant 0 : i32
    return %c0_i32, %arg0 : i32, i32
  }
  func.func @transform_2(%arg0: i32) -> (i32, i32) {
    %c0_i32 = arith.constant 0 : i32
    %c0_i32_0 = arith.constant 0 : i32
    return %c0_i32, %arg0 : i32, i32
  }
  func.func @transform_3(%arg0: i32) -> (i32, i32) {
    %c0_i32 = arith.constant 0 : i32
    %c0_i32_0 = arith.constant 0 : i32
    return %c0_i32, %arg0 : i32, i32
  }
}

module attributes {stable_mosaic.version = 11 : i64} {
  func.func @_apply_x_onehot_kernel(%arg0: i32, %arg1: memref<9x128xf32, #tpu.memory_space<vmem>>, %arg2: memref<1x128xi32, #tpu.memory_space<vmem>>, %arg3: memref<3x128xf32, #tpu.memory_space<vmem>>, %arg4: memref<3x128xf32, #tpu.memory_space<vmem>>) attributes {dimension_semantics = [#tpu.dimension_semantics<parallel>], iteration_bounds = array<i64: 1>, scalar_prefetch = 0 : i64, scratch_operands = 0 : i64, tpu.core_type = #tpu.core_type<tc>, window_params = [{pipeline_mode = #tpu.pipeline_mode<synchronous>, transform_indices = @transform_0, window_bounds = array<i64: 9, 128>}, {transform_indices = @transform_1, window_bounds = array<i64: 1, 128>}, {transform_indices = @transform_2, window_bounds = array<i64: 3, 128>}, {transform_indices = @transform_3, window_bounds = array<i64: 3, 128>}]} {
    %c0 = arith.constant 0 : index
    %c0_0 = arith.constant 0 : index
    %0 = vector.load %arg2[%c0, %c0_0] : memref<1x128xi32, #tpu.memory_space<vmem>>, vector<1x128xi32>
    %1 = tpu.iota {dimensions = array<i32: 0>} : vector<128x128xi32>
    %2 = vector.broadcast %0 : vector<1x128xi32> to vector<128x128xi32>
    %3 = arith.cmpi eq, %1, %2 : vector<128x128xi32>
    %4 = arith.extui %3 : vector<128x128xi1> to vector<128x128xi32>
    %5 = arith.sitofp %4 : vector<128x128xi32> to vector<128x128xf32>
    %c0_1 = arith.constant 0 : index
    %c0_2 = arith.constant 0 : index
    %6 = vector.load %arg1[%c0_1, %c0_2] : memref<9x128xf32, #tpu.memory_space<vmem>>, vector<9x128xf32>
    %cst = arith.constant dense<0.000000e+00> : vector<9x128xf32>
    %7 = tpu.matmul %6, %5, %cst {dimension_numbers = #tpu.dot_dimension_numbers<[1], [0], [0], [1], [0, 0, 1, 1], [], []>} : vector<9x128xf32>, vector<128x128xf32>, vector<9x128xf32> -> vector<9x128xf32>
    %c0_3 = arith.constant 0 : index
    %c0_4 = arith.constant 0 : index
    %8 = vector.load %arg3[%c0_3, %c0_4] : memref<3x128xf32, #tpu.memory_space<vmem>>, vector<1x128xf32>
    %c1 = arith.constant 1 : index
    %c0_5 = arith.constant 0 : index
    %9 = vector.load %arg3[%c1, %c0_5] : memref<3x128xf32, #tpu.memory_space<vmem>>, vector<1x128xf32>
    %c2 = arith.constant 2 : index
    %c0_6 = arith.constant 0 : index
    %10 = vector.load %arg3[%c2, %c0_6] : memref<3x128xf32, #tpu.memory_space<vmem>>, vector<1x128xf32>
    %11 = vector.extract_strided_slice %7 {offsets = [0, 0], sizes = [1, 128], strides = [1, 1]} : vector<9x128xf32> to vector<1x128xf32>
    %12 = arith.mulf %11, %8 : vector<1x128xf32>
    %13 = vector.extract_strided_slice %7 {offsets = [1, 0], sizes = [1, 128], strides = [1, 1]} : vector<9x128xf32> to vector<1x128xf32>
    %14 = arith.mulf %13, %9 : vector<1x128xf32>
    %15 = arith.addf %12, %14 : vector<1x128xf32>
    %16 = vector.extract_strided_slice %7 {offsets = [2, 0], sizes = [1, 128], strides = [1, 1]} : vector<9x128xf32> to vector<1x128xf32>
    %17 = arith.mulf %16, %10 : vector<1x128xf32>
    %18 = arith.addf %15, %17 : vector<1x128xf32>
    %19 = math.floor %18 : vector<1x128xf32>
    %20 = arith.subf %18, %19 : vector<1x128xf32>
    %c0_7 = arith.constant 0 : index
    %c0_8 = arith.constant 0 : index
    %21 = vector.load %arg4[%c0_7, %c0_8] : memref<3x128xf32, #tpu.memory_space<vmem>>, vector<1x128xf32>
    tpu.vector_store %arg4[%c0_7, %c0_8], %20 {strides = array<i32>} : memref<3x128xf32, #tpu.memory_space<vmem>>, vector<1x128xf32>,
    %22 = vector.extract_strided_slice %7 {offsets = [3, 0], sizes = [1, 128], strides = [1, 1]} : vector<9x128xf32> to vector<1x128xf32>
    %23 = arith.mulf %22, %8 : vector<1x128xf32>
    %24 = vector.extract_strided_slice %7 {offsets = [4, 0], sizes = [1, 128], strides = [1, 1]} : vector<9x128xf32> to vector<1x128xf32>
    %25 = arith.mulf %24, %9 : vector<1x128xf32>
    %26 = arith.addf %23, %25 : vector<1x128xf32>
    %27 = vector.extract_strided_slice %7 {offsets = [5, 0], sizes = [1, 128], strides = [1, 1]} : vector<9x128xf32> to vector<1x128xf32>
    %28 = arith.mulf %27, %10 : vector<1x128xf32>
    %29 = arith.addf %26, %28 : vector<1x128xf32>
    %30 = math.floor %29 : vector<1x128xf32>
    %31 = arith.subf %29, %30 : vector<1x128xf32>
    %c1_9 = arith.constant 1 : index
    %c0_10 = arith.constant 0 : index
    %32 = vector.load %arg4[%c1_9, %c0_10] : memref<3x128xf32, #tpu.memory_space<vmem>>, vector<1x128xf32>
    tpu.vector_store %arg4[%c1_9, %c0_10], %31 {strides = array<i32>} : memref<3x128xf32, #tpu.memory_space<vmem>>, vector<1x128xf32>,
    %33 = vector.extract_strided_slice %7 {offsets = [6, 0], sizes = [1, 128], strides = [1, 1]} : vector<9x128xf32> to vector<1x128xf32>
    %34 = arith.mulf %33, %8 : vector<1x128xf32>
    %35 = vector.extract_strided_slice %7 {offsets = [7, 0], sizes = [1, 128], strides = [1, 1]} : vector<9x128xf32> to vector<1x128xf32>
    %36 = arith.mulf %35, %9 : vector<1x128xf32>
    %37 = arith.addf %34, %36 : vector<1x128xf32>
    %38 = vector.extract_strided_slice %7 {offsets = [8, 0], sizes = [1, 128], strides = [1, 1]} : vector<9x128xf32> to vector<1x128xf32>
    %39 = arith.mulf %38, %10 : vector<1x128xf32>
    %40 = arith.addf %37, %39 : vector<1x128xf32>
    %41 = math.floor %40 : vector<1x128xf32>
    %42 = arith.subf %40, %41 : vector<1x128xf32>
    %c2_11 = arith.constant 2 : index
    %c0_12 = arith.constant 0 : index
    %43 = vector.load %arg4[%c2_11, %c0_12] : memref<3x128xf32, #tpu.memory_space<vmem>>, vector<1x128xf32>
    tpu.vector_store %arg4[%c2_11, %c0_12], %42 {strides = array<i32>} : memref<3x128xf32, #tpu.memory_space<vmem>>, vector<1x128xf32>,
    return
  }
  func.func @transform_0(%arg0: i32) -> (i32, i32) {
    %c0_i32 = arith.constant 0 : i32
    %c0_i32_0 = arith.constant 0 : i32
    %c0_i32_1 = arith.constant 0 : i32
    return %c0_i32, %c0_i32_0 : i32, i32
  }
  func.func @transform_1(%arg0: i32) -> (i32, i32) {
    %c0_i32 = arith.constant 0 : i32
    %c0_i32_0 = arith.constant 0 : i32
    return %c0_i32, %arg0 : i32, i32
  }
  func.func @transform_2(%arg0: i32) -> (i32, i32) {
    %c0_i32 = arith.constant 0 : i32
    %c0_i32_0 = arith.constant 0 : i32
    return %c0_i32, %arg0 : i32, i32
  }
  func.func @transform_3(%arg0: i32) -> (i32, i32) {
    %c0_i32 = arith.constant 0 : i32
    %c0_i32_0 = arith.constant 0 : i32
    return %c0_i32, %arg0 : i32, i32
  }
}

</mosaic_0001>

<bundles_post_ra>
// kernel: random_slz.3
= control target key start
LH: loop header
LB: loop body
LE: loop exit
PB: predicated region body
PF: predicated region fallthrough
CT: control target
= control target key end

     0   :  { %v15_v0 = vlaneseq  ;;  %v346_v9 = vmov 1.0|1.0   ;;  %s394_s1 = inlined_call_operand.vmem [shape: s32[1,128], index: 1, kind: input, shape index: {}]   ;;  %s395_s0 = inlined_call_operand.vmem [shape: f32[9,128], index: 0, kind: input, shape index: {}]   ;;  %s396_s2 = inlined_call_operand.vmem [shape: f32[3,128], index: 2, kind: input, shape index: {}]   ;;  %s397_s3 = inlined_call_operand.vmem [shape: f32[3,128], index: 3, kind: output, shape index: {}]  }
   0x1   :  { %v227_v1 = vld [vmem:[%s394_s1] ss:$0 sm:$0xff]  ;;  %v85_v20 = vld [vmem:[%s395_s0 + $0x8] sm:$0x1]  ;;  %v162_v21 = vld [vmem:[%s396_s2 + $0x1] sm:$0x1] }
   0x2   :  { %v84_v2 = vld [vmem:[%s395_s0] sm:$0xff]  ;;  %v16_v3 = vshrl.u32 %v15_v0, 7  ;;  %v166_v24 = vrot.slane %v162_v21, 7  ;;  %v188_v26 = vrot.slane %v162_v21, 4  ;;  %v208_v29 = vrot.slane %v162_v21, 1 }
   0x3   :  { %310 = vmatprep.mubr.f32.mxu0 %v84_v2  ;;  %v163_v22 = vld [vmem:[%s396_s2 + $0x2] sm:$0x1]  ;;  %v161_v23 = vld [vmem:[%s396_s2] sm:$0x1] }
   0x4   :  { %v17_v4 = vadd.s32 8, %v16_v3  ;;  %vm36_vm0 = vcmp.eq.s32.totalorder %v16_v3, %v227_v1  ;;  %v18_v5 = vadd.s32 16, %v16_v3  ;;  %v19_v6 = vadd.s32 24, %v16_v3 }
   0x5   :  { %v20_v7 = vadd.s32 32, %v16_v3  ;;  %v21_v8 = vadd.s32 40, %v16_v3  ;;  %v22_v10 = vadd.s32 48, %v16_v3  ;;  %v23_v11 = vadd.s32 56, %v16_v3 }
   0x6   :  { %vm37_vm1 = vcmp.eq.s32.totalorder %v17_v4, %v227_v1  ;;  %vm38_vm2 = vcmp.eq.s32.totalorder %v18_v5, %v227_v1  ;;  %vm39_vm3 = vcmp.eq.s32.totalorder %v19_v6, %v227_v1  ;;  %v24_v12 = vadd.s32 64, %v16_v3 }
   0x7   :  { %vm313_vm4 = vmpackc.low %vm37_vm1, %vm36_vm0  ;;  %vm40_vm6 = vcmp.eq.s32.totalorder %v20_v7, %v227_v1  ;;  %vm41_vm7 = vcmp.eq.s32.totalorder %v21_v8, %v227_v1  ;;  %vm42_vm9 = vcmp.eq.s32.totalorder %v22_v10, %v227_v1  ;;  %vm43_vm10 = vcmp.eq.s32.totalorder %v23_v11, %v227_v1 }
   0x8   :  { %314 = vmatprep.subr.msk.bf16.mxu0 %vm313_vm4, %v346_v9  ;;  %vm317_vm5 = vmpackc.low %vm39_vm3, %vm38_vm2  ;;  %v25_v13 = vadd.s32 72, %v16_v3  ;;  %vm44_vm12 = vcmp.eq.s32.totalorder %v24_v12, %v227_v1  ;;  %v26_v14 = vadd.s32 80, %v16_v3  ;;  %v27_v15 = vadd.s32 88, %v16_v3 }
   0x9   :  { %316 = vmatpush3.bf16.msk.msra.mxu0 %vm313_vm4, %v346_v9  ;;  %vm321_vm8 = vmpackc.low %vm41_vm7, %vm40_vm6  ;;  %v28_v16 = vadd.s32 96, %v16_v3  ;;  %v29_v17 = vadd.s32 104, %v16_v3  ;;  %v30_v18 = vadd.s32 112, %v16_v3  ;;  %v31_v19 = vadd.s32 120, %v16_v3 }
   0xa   :  { %318 = vmatprep.subr.msk.bf16.mxu0 %vm317_vm5, %v346_v9  ;;  %vm325_vm11 = vmpackc.low %vm43_vm10, %vm42_vm9  ;;  %vm45_vm13 = vcmp.eq.s32.totalorder %v25_v13, %v227_v1  ;;  %vm46_vm15 = vcmp.eq.s32.totalorder %v26_v14, %v227_v1  ;;  %vm47_vm0 = vcmp.eq.s32.totalorder %v27_v15, %v227_v1  ;;  %v174_v25 = vrot.slane %v163_v22, 6 }
   0xb   :  { %vm329_vm14 = vmpackc.low %vm45_vm13, %vm44_vm12  ;;  %vm48_vm2 = vcmp.eq.s32.totalorder %v28_v16, %v227_v1  ;;  %vm49_vm3 = vcmp.eq.s32.totalorder %v29_v17, %v227_v1  ;;  %vm51_vm6 = vcmp.eq.s32.totalorder %v31_v19, %v227_v1  ;;  %v195_v27 = vrot.slane %v163_v22, 3 }
   0xc   :  { %vm333_vm1 = vmpackc.low %vm47_vm0, %vm46_vm15  ;;  %v185_v30 = vrot.slane %v161_v23, 5  ;;  %v205_v32 = vrot.slane %v161_v23, 2 }
   0xd   :  { %320 = vmatpush3.bf16.msk.msra.mxu0 %vm317_vm5, %v346_v9  ;;  %vm337_vm4 = vmpackc.low %vm49_vm3, %vm48_vm2  ;;  %vm50_vm5 = vcmp.eq.s32.totalorder %v30_v18, %v227_v1 }
   0xe   :  { %322 = vmatprep.subr.msk.bf16.mxu0 %vm321_vm8, %v346_v9  ;;  %vm341_vm7 = vmpackc.low %vm51_vm6, %vm50_vm5 }
  0x11   :  { %324 = vmatpush3.bf16.msk.msra.mxu0 %vm321_vm8, %v346_v9 }
  0x12   :  { %326 = vmatprep.subr.msk.bf16.mxu0 %vm325_vm11, %v346_v9 }
  0x15   :  { %328 = vmatpush3.bf16.msk.msra.mxu0 %vm325_vm11, %v346_v9 }
  0x16   :  { %330 = vmatprep.subr.msk.bf16.mxu0 %vm329_vm14, %v346_v9 }
  0x19   :  { %332 = vmatpush3.bf16.msk.msra.mxu0 %vm329_vm14, %v346_v9 }
  0x1a   :  { %334 = vmatprep.subr.msk.bf16.mxu0 %vm333_vm1, %v346_v9 }
  0x1d   :  { %336 = vmatpush3.bf16.msk.msra.mxu0 %vm333_vm1, %v346_v9 }
  0x1e   :  { %338 = vmatprep.subr.msk.bf16.mxu0 %vm337_vm4, %v346_v9 }
  0x21   :  { %340 = vmatpush3.bf16.msk.msra.mxu0 %vm337_vm4, %v346_v9 }
  0x22   :  { %342 = vmatprep.subr.msk.bf16.mxu0 %vm341_vm7, %v346_v9 }
  0x25   :  { %344 = vmatpush3.bf16.msk.msra.mxu0 %vm341_vm7, %v346_v9 }
  0x28   :  { %311 = vmatmul.mubr.f32.vlgmr.msra.gmra.mrb[0].mxu0 %v85_v20 }
  0xfb   :  { %v312_v28 = vpop.f32.mrb[0].mxu0 }
  0xfc   :  { %v152_v31 = vpop.f32.mrb[1].mxu0  ;;  %v215_v37 = vmul.f32 %v312_v28, %v163_v22 }
  0xfd   :  { %v168_v33 = vmul.f32 %v166_v24, %v152_v31  ;;  %v176_v34 = vmul.f32 %v174_v25, %v152_v31  ;;  %v190_v35 = vmul.f32 %v188_v26, %v152_v31  ;;  %v197_v36 = vmul.f32 %v195_v27, %v152_v31 }
  0xfe   :  { %v164_v38 = vmul.f32 %v161_v23, %v152_v31  ;;  %v210_v40 = vmul.f32 %v208_v29, %v152_v31  ;;  %v187_v41 = vmul.f32 %v185_v30, %v152_v31  ;;  %v207_v45 = vmul.f32 %v205_v32, %v152_v31 }
  0xff   :  { %v170_v39 = vrot.slane %v168_v33, 1  ;;  %v192_v42 = vrot.slane %v190_v35, 1  ;;  %v178_v44 = vrot.slane %v176_v34, 2  ;;  %v199_v48 = vrot.slane %v197_v36, 2 }
 0x100   :  { %v212_v46 = vrot.slane %v210_v40, 1  ;;  %v217_v49 = vrot.slane %v215_v37, 2 }
 0x101   :  { %v172_v43 = vadd.f32 %v170_v39, %v164_v38  ;;  %v194_v47 = vadd.f32 %v192_v42, %v187_v41 }
 0x102   :  { %v214_v51 = vadd.f32 %v212_v46, %v207_v45 }
 0x103   :  { %v180_v50 = vadd.f32 %v178_v44, %v172_v43  ;;  %v201_v52 = vadd.f32 %v199_v48, %v194_v47 }
 0x104   :  { %v219_v54 = vadd.f32 %v217_v49, %v214_v51 }
 0x105   :  { %v181_v53 = vfloor.f32 %v180_v50  ;;  %v202_v55 = vfloor.f32 %v201_v52 }
 0x106   :  { %v220_v57 = vfloor.f32 %v219_v54 }
 0x107   :  { %v182_v56 = vsub.f32 %v180_v50, %v181_v53  ;;  %v203_v58 = vsub.f32 %v201_v52, %v202_v55 }
 0x108   :  { %v221_v59 = vsub.f32 %v219_v54, %v220_v57 }
 0x109   :  { %183 = vst [vmem:[%s397_s3] sm:$0x1] %v182_v56  ;;  %204 = vst [vmem:[%s397_s3 - $0x2] sm:$0x8] %v203_v58 }
 0x10a   :  { %222 = vst [vmem:[%s397_s3 - $0x4] sm:$0x40] %v221_v59 }

// kernel: random_slz.2
= control target key start
LH: loop header
LB: loop body
LE: loop exit
PB: predicated region body
PF: predicated region fallthrough
CT: control target
= control target key end

     0   :  { %v674_v4 = vmov 0.0   ;;  %s1228_s0 = inlined_call_operand.vmem [shape: s32[32,128], index: 0, kind: input, shape index: {}]   ;;  %s1229_s1 = inlined_call_operand.vmem [shape: f32[9,128], index: 1, kind: input, shape index: {}]   ;;  %s1230_s2 = inlined_call_operand.vmem [shape: f32[9,128], index: 2, kind: output, shape index: {0}]   ;;  %s1231_s3 = inlined_call_operand.vmem [shape: f32[9,128], index: 3, kind: output, shape index: {1}]  }
   0x1   :  { %v13_v0 = vld [vmem:[%s1228_s0] sm:$0xff]  ;;  %v14_v1 = vld [vmem:[%s1228_s0 + $0x8] sm:$0xff]  ;;  %v15_v2 = vld [vmem:[%s1228_s0 + $0x10] sm:$0xff] }
   0x2   :  { %v16_v3 = vld [vmem:[%s1228_s0 + $0x18] sm:$0xff]  ;;  %vm17_vm0 = vcmp.eq.s32.totalorder %v13_v0, 0  ;;  %vm18_vm1 = vcmp.eq.s32.totalorder %v14_v1, 0  ;;  %vm19_vm2 = vcmp.eq.s32.totalorder %v15_v2, 0  ;;  %vm29_vm3 = vcmp.eq.s32.totalorder %v13_v0, 1 }
   0x3   :  { %vm20_vm4 = vcmp.eq.s32.totalorder %v16_v3, 0  ;;  %v707_v5 = vsel %vm17_vm0, 1.0, %v674_v4  ;;  %v709_v6 = vsel %vm18_vm1, 1.0, %v674_v4  ;;  %v711_v7 = vsel %vm19_vm2, 1.0, %v674_v4 }
   0x4   :  { %v713_v8 = vsel %vm20_vm4, 1.0, %v674_v4  ;;  %vm30_vm5 = vcmp.eq.s32.totalorder %v14_v1, 1  ;;  %vm31_vm6 = vcmp.eq.s32.totalorder %v15_v2, 1  ;;  %vm32_vm7 = vcmp.eq.s32.totalorder %v16_v3, 1 }
   0x5   :  { %v715_v9 = vsel %vm29_vm3, 1.0, %v674_v4  ;;  %v717_v10 = vsel %vm30_vm5, 1.0, %v674_v4  ;;  %v719_v11 = vsel %vm31_vm6, 1.0, %v674_v4  ;;  %v721_v12 = vsel %vm32_vm7, 1.0, %v674_v4 }
   0x6   :  { %vm41_vm8 = vcmp.eq.s32.totalorder %v13_v0, 2  ;;  %vm42_vm9 = vcmp.eq.s32.totalorder %v14_v1, 2  ;;  %vm43_vm10 = vcmp.eq.s32.totalorder %v15_v2, 2  ;;  %vm44_vm11 = vcmp.eq.s32.totalorder %v16_v3, 2 }
   0x7   :  { %v648_v13 = vsel %vm41_vm8, 1.0, %v674_v4  ;;  %v649_v14 = vsel %vm42_vm9, 1.0, %v674_v4  ;;  %v650_v15 = vsel %vm43_vm10, 1.0, %v674_v4  ;;  %v651_v16 = vsel %vm44_vm11, 1.0, %v674_v4 }
   0x8   :  { %vm53_vm12 = vcmp.eq.s32.totalorder %v13_v0, 3  ;;  %vm54_vm13 = vcmp.eq.s32.totalorder %v14_v1, 3  ;;  %vm55_vm14 = vcmp.eq.s32.totalorder %v15_v2, 3  ;;  %vm56_vm15 = vcmp.eq.s32.totalorder %v16_v3, 3 }
   0x9   :  { %v723_v17 = vsel %vm53_vm12, 1.0, %v674_v4  ;;  %v725_v18 = vsel %vm54_vm13, 1.0, %v674_v4  ;;  %v727_v19 = vsel %vm55_vm14, 1.0, %v674_v4  ;;  %v729_v20 = vsel %vm56_vm15, 1.0, %v674_v4 }
   0xa   :  { %vm65_vm0 = vcmp.eq.s32.totalorder %v13_v0, 4  ;;  %vm66_vm1 = vcmp.eq.s32.totalorder %v14_v1, 4  ;;  %vm67_vm2 = vcmp.eq.s32.totalorder %v15_v2, 4  ;;  %vm68_vm3 = vcmp.eq.s32.totalorder %v16_v3, 4 }
   0xb   :  { %v731_v21 = vsel %vm65_vm0, 1.0, %v674_v4  ;;  %v733_v22 = vsel %vm66_vm1, 1.0, %v674_v4  ;;  %v735_v23 = vsel %vm67_vm2, 1.0, %v674_v4  ;;  %v737_v24 = vsel %vm68_vm3, 1.0, %v674_v4 }
   0xc   :  { %vm77_vm4 = vcmp.eq.s32.totalorder %v13_v0, 5  ;;  %vm78_vm5 = vcmp.eq.s32.totalorder %v14_v1, 5  ;;  %vm79_vm6 = vcmp.eq.s32.totalorder %v15_v2, 5  ;;  %vm80_vm7 = vcmp.eq.s32.totalorder %v16_v3, 5 }
   0xd   :  { %v660_v25 = vsel %vm77_vm4, 1.0, %v674_v4  ;;  %v661_v26 = vsel %vm78_vm5, 1.0, %v674_v4  ;;  %v662_v27 = vsel %vm79_vm6, 1.0, %v674_v4  ;;  %v663_v28 = vsel %vm80_vm7, 1.0, %v674_v4 }
   0xe   :  { %v741_v29 = vadd.f32 %v723_v17, %v707_v5  ;;  %v745_v30 = vadd.f32 %v725_v18, %v709_v6  ;;  %v749_v31 = vadd.f32 %v727_v19, %v711_v7  ;;  %v753_v32 = vadd.f32 %v729_v20, %v713_v8 }
   0xf   :  { %v93_v33 = vadd.f32 %v648_v13, %v715_v9  ;;  %v94_v34 = vadd.f32 %v649_v14, %v717_v10  ;;  %v95_v35 = vadd.f32 %v650_v15, %v719_v11  ;;  %v96_v36 = vadd.f32 %v651_v16, %v721_v12 }
  0x10   :  { %v761_v37 = vadd.f32 %v731_v21, %v741_v29  ;;  %v765_v38 = vadd.f32 %v733_v22, %v745_v30  ;;  %v769_v39 = vadd.f32 %v735_v23, %v749_v31  ;;  %v773_v40 = vadd.f32 %v737_v24, %v753_v32 }
  0x11   :  { %v97_v41 = vadd.f32 %v723_v17, %v93_v33  ;;  %v98_v42 = vadd.f32 %v725_v18, %v94_v34  ;;  %v99_v43 = vadd.f32 %v727_v19, %v95_v35  ;;  %v100_v44 = vadd.f32 %v729_v20, %v96_v36 }
  0x12   :  { %v109_v45 = vadd.f32 %v731_v21, %v648_v13  ;;  %v110_v46 = vadd.f32 %v733_v22, %v649_v14  ;;  %v111_v47 = vadd.f32 %v735_v23, %v650_v15  ;;  %v112_v48 = vadd.f32 %v737_v24, %v651_v16 }
  0x13   :  { %v783_v49 = vadd.f32 %v660_v25, %v97_v41  ;;  %v785_v50 = vadd.f32 %v661_v26, %v98_v42  ;;  %v787_v51 = vadd.f32 %v662_v27, %v99_v43  ;;  %v789_v52 = vadd.f32 %v663_v28, %v100_v44 }
  0x14   :  { %v791_v53 = vadd.f32 %v660_v25, %v109_v45  ;;  %v793_v54 = vadd.f32 %v661_v26, %v110_v46  ;;  %v795_v55 = vadd.f32 %v662_v27, %v111_v47  ;;  %v797_v56 = vadd.f32 %v663_v28, %v112_v48 }
  0x15   :  { %v800_v57 = vsub.f32 0.0, %v707_v5  ;;  %v803_v58 = vsub.f32 0.0, %v709_v6  ;;  %v806_v59 = vsub.f32 0.0, %v711_v7  ;;  %v809_v60 = vsub.f32 0.0, %v713_v8 }
  0x16   :  { %v129_v61 = vsub.f32 0.0, %v648_v13  ;;  %v130_v62 = vsub.f32 0.0, %v649_v14  ;;  %v131_v63 = vsub.f32 0.0, %v650_v15  ;;  %v132_v0 = vsub.f32 0.0, %v651_v16 }
  0x17   :  { %v121_v1 = vadd.f32 %v715_v9, %v800_v57  ;;  %v122_v2 = vadd.f32 %v717_v10, %v803_v58  ;;  %v123_v3 = vadd.f32 %v719_v11, %v806_v59  ;;  %v124_v4 = vadd.f32 %v721_v12, %v809_v60 }
  0x18   :  { %v133_v33 = vadd.f32 %v715_v9, %v129_v61  ;;  %v134_v34 = vadd.f32 %v717_v10, %v130_v62  ;;  %v135_v13 = vadd.f32 %v719_v11, %v131_v63  ;;  %v136_v14 = vadd.f32 %v721_v12, %v132_v0 }
  0x19   :  { %v824_v15 = vadd.f32 %v723_v17, %v121_v1  ;;  %v827_v16 = vadd.f32 %v725_v18, %v122_v2  ;;  %v830_v35 = vadd.f32 %v727_v19, %v123_v3  ;;  %v833_v36 = vadd.f32 %v729_v20, %v124_v4 }
  0x1a   :  { %v137_v41 = vsub.f32 0.0, %v660_v25  ;;  %v138_v9 = vsub.f32 0.0, %v661_v26  ;;  %v139_v42 = vsub.f32 0.0, %v662_v27  ;;  %v140_v10 = vsub.f32 0.0, %v663_v28 }
  0x1b   :  { %v145_v11 = vadd.f32 %v707_v5, %v129_v61  ;;  %v146_v12 = vadd.f32 %v709_v6, %v130_v62  ;;  %v147_v43 = vadd.f32 %v711_v7, %v131_v63  ;;  %v148_v44 = vadd.f32 %v713_v8, %v132_v0 }
  0x1c   :  { %v839_v45 = vadd.f32 %v137_v41, %v133_v33  ;;  %v841_v46 = vadd.f32 %v138_v9, %v134_v34  ;;  %v843_v47 = vadd.f32 %v139_v42, %v135_v13  ;;  %v845_v48 = vadd.f32 %v140_v10, %v136_v14 }
  0x1d   :  { %v149_v25 = vsub.f32 0.0, %v723_v17  ;;  %v150_v26 = vsub.f32 0.0, %v725_v18  ;;  %v151_v5 = vsub.f32 0.0, %v727_v19  ;;  %v152_v6 = vsub.f32 0.0, %v729_v20 }
  0x1e   :  { %1234 = vst [vmem:[#allocation2_spill] sm:$0xff] %v839_v45  ;;  %1235 = vst [vmem:[#allocation3_spill] sm:$0xff] %v841_v46  ;;  %v173_v7 = vmul.f32 %v749_v31, %v741_v29  ;;  %v174_v8 = vmul.f32 %v753_v32, %v745_v30  ;;  %v175_v27 = vmul.f32 %v795_v55, %v783_v49 }
  0x1f   :  { %v176_v28 = vmul.f32 %v797_v56, %v785_v50  ;;  %v153_v1 = vadd.f32 %v149_v25, %v145_v11  ;;  %v154_v17 = vadd.f32 %v150_v26, %v146_v12  ;;  %v155_v2 = vadd.f32 %v151_v5, %v147_v43 }
  0x20   :  { %v156_v18 = vadd.f32 %v152_v6, %v148_v44  ;;  %v165_v3 = vadd.f32 %v149_v25, %v129_v61  ;;  %v166_v19 = vadd.f32 %v150_v26, %v130_v62  ;;  %v167_v4 = vadd.f32 %v151_v5, %v131_v63 }
  0x21   :  { %v168_v20 = vadd.f32 %v152_v6, %v132_v0  ;;  %v157_v33 = vadd.f32 %v731_v21, %v153_v1  ;;  %v158_v34 = vadd.f32 %v733_v22, %v154_v17  ;;  %v159_v13 = vadd.f32 %v735_v23, %v155_v2 }
  0x22   :  { %v160_v14 = vadd.f32 %v737_v24, %v156_v18  ;;  %v863_v46 = vadd.f32 %v165_v3, %v137_v41  ;;  %v865_v45 = vadd.f32 %v166_v19, %v138_v9  ;;  %v867_v11 = vadd.f32 %v167_v4, %v139_v42 }
  0x23   :  { %v869_v12 = vadd.f32 %v168_v20, %v140_v10  ;;  %v871_v61 = vadd.f32 %v157_v33, %v137_v41  ;;  %v873_v62 = vadd.f32 %v158_v34, %v138_v9  ;;  %v875_v63 = vadd.f32 %v159_v13, %v139_v42 }
  0x24   :  { %v877_v21 = vadd.f32 %v160_v14, %v140_v10  ;;  %v177_v22 = vadd.f32 %v175_v27, %v173_v7  ;;  %v178_v23 = vadd.f32 %v176_v28, %v174_v8  ;;  %v179_v24 = vmul.f32 %v843_v47, %v761_v37 }
  0x25   :  { %v180_v0 = vmul.f32 %v845_v48, %v765_v38  ;;  %v183_v43 = vmul.f32 %v787_v51, %v741_v29  ;;  %v184_v41 = vmul.f32 %v789_v52, %v745_v30  ;;  %v185_v9 = vmul.f32 %v806_v59, %v783_v49 }
  0x26   :  { %v186_v42 = vmul.f32 %v809_v60, %v785_v50  ;;  %v891_v10 = vadd.f32 %v179_v24, %v177_v22  ;;  %v189_v25 = vmul.f32 %v875_v63, %v761_v37  ;;  %v190_v26 = vmul.f32 %v877_v21, %v765_v38 }
  0x27   :  { %v893_v44 = vadd.f32 %v180_v0, %v178_v23  ;;  %v187_v5 = vadd.f32 %v185_v9, %v183_v43  ;;  %v193_v7 = vmul.f32 %v769_v39, %v741_v29  ;;  %v194_v8 = vmul.f32 %v773_v40, %v745_v30 }
  0x28   :  { %v188_v6 = vadd.f32 %v186_v42, %v184_v41  ;;  %v195_v27 = vmul.f32 %v830_v35, %v783_v49  ;;  %v196_v28 = vmul.f32 %v833_v36, %v785_v50  ;;  %v199_v1 = vmul.f32 %v867_v11, %v761_v37 }
  0x29   :  { %v200_v17 = vmul.f32 %v869_v12, %v765_v38  ;;  %v911_v2 = vadd.f32 %v189_v25, %v187_v5  ;;  %v203_v29 = vmul.f32 %v791_v53, %v749_v31  ;;  %v204_v30 = vmul.f32 %v793_v54, %v753_v32 }
  0x2a   :  { %v913_v18 = vadd.f32 %v190_v26, %v188_v6  ;;  %v197_v49 = vadd.f32 %v195_v27, %v193_v7  ;;  %v198_v3 = vadd.f32 %v196_v28, %v194_v8  ;;  %v205_v50 = vmul.f32 %v800_v57, %v795_v55  ;;  %v1236_v27 = vld [vmem:[#allocation2_spill] sm:$0xff]  ;;  %v1237_v28 = vld [vmem:[#allocation3_spill] sm:$0xff] }
  0x2b   :  { %v206_v37 = vmul.f32 %v803_v58, %v797_v56  ;;  %v209_v38 = vmul.f32 %v843_v47, %v824_v15  ;;  %v210_v19 = vmul.f32 %v845_v48, %v827_v16  ;;  %v213_v4 = vmul.f32 %v791_v53, %v787_v51 }
  0x2c   :  { %v214_v20 = vmul.f32 %v793_v54, %v789_v52  ;;  %v931_v33 = vadd.f32 %v199_v1, %v197_v49  ;;  %v933_v34 = vadd.f32 %v200_v17, %v198_v3  ;;  %v207_v13 = vadd.f32 %v205_v50, %v203_v29 }
  0x2d   :  { %v208_v14 = vadd.f32 %v206_v37, %v204_v30  ;;  %v215_v22 = vmul.f32 %v806_v59, %v800_v57  ;;  %v216_v23 = vmul.f32 %v809_v60, %v803_v58  ;;  %v219_v24 = vmul.f32 %v875_v63, %v824_v15 }
  0x2e   :  { %v220_v0 = vmul.f32 %v877_v21, %v827_v16  ;;  %v943_v43 = vadd.f32 %v209_v38, %v207_v13  ;;  %v223_v9 = vmul.f32 %v791_v53, %v769_v39  ;;  %v224_v42 = vmul.f32 %v793_v54, %v773_v40 }
  0x2f   :  { %v945_v41 = vadd.f32 %v210_v19, %v208_v14  ;;  %v217_v25 = vadd.f32 %v215_v22, %v213_v4  ;;  %v218_v26 = vadd.f32 %v216_v23, %v214_v20  ;;  %v225_v5 = vmul.f32 %v830_v35, %v800_v57 }
  0x30   :  { %v226_v6 = vmul.f32 %v833_v36, %v803_v58  ;;  %v229_v7 = vmul.f32 %v867_v11, %v824_v15  ;;  %v230_v8 = vmul.f32 %v869_v12, %v827_v16  ;;  %v233_v53 = vmul.f32 %v1236_v27, %v749_v31 }
  0x31   :  { %v234_v54 = vmul.f32 %v1237_v28, %v753_v32  ;;  %v221_v1 = vadd.f32 %v219_v24, %v217_v25  ;;  %v963_v17 = vadd.f32 %v220_v0, %v218_v26  ;;  %v227_v29 = vadd.f32 %v225_v5, %v223_v9 }
  0x32   :  { %v228_v57 = vadd.f32 %v226_v6, %v224_v42  ;;  %v235_v58 = vmul.f32 %v871_v61, %v795_v55  ;;  %v236_v15 = vmul.f32 %v873_v62, %v797_v56  ;;  %v239_v16 = vmul.f32 %v863_v46, %v843_v47 }
  0x33   :  { %v240_v31 = vmul.f32 %v865_v45, %v845_v48  ;;  %v231_v30 = vadd.f32 %v229_v7, %v227_v29  ;;  %v243_v32 = vmul.f32 %v1236_v27, %v787_v51  ;;  %v244_v3 = vmul.f32 %v1237_v28, %v789_v52 }
  0x34   :  { %v232_v49 = vadd.f32 %v230_v8, %v228_v57  ;;  %v237_v50 = vadd.f32 %v235_v58, %v233_v53  ;;  %v238_v37 = vadd.f32 %v236_v15, %v234_v54  ;;  %v245_v55 = vmul.f32 %v871_v61, %v806_v59 }
  0x35   :  { %v246_v56 = vmul.f32 %v873_v62, %v809_v60  ;;  %v249_v47 = vmul.f32 %v863_v46, %v875_v63  ;;  %v250_v48 = vmul.f32 %v865_v45, %v877_v21  ;;  %v253_v51 = vmul.f32 %v1236_v27, %v769_v39 }
  0x36   :  { %v254_v52 = vmul.f32 %v1237_v28, %v773_v40  ;;  %v241_v38 = vadd.f32 %v239_v16, %v237_v50  ;;  %v242_v19 = vadd.f32 %v240_v31, %v238_v37  ;;  %v247_v4 = vadd.f32 %v245_v55, %v243_v32 }
  0x37   :  { %v248_v20 = vadd.f32 %v246_v56, %v244_v3  ;;  %v255_v59 = vmul.f32 %v871_v61, %v830_v35  ;;  %v256_v60 = vmul.f32 %v873_v62, %v833_v36  ;;  %v259_v63 = vmul.f32 %v867_v11, %v863_v46 }
  0x38   :  { %v260_v21 = vmul.f32 %v869_v12, %v865_v45  ;;  %v251_v39 = vadd.f32 %v249_v47, %v247_v4  ;;  %v263_v40 = vmul.f32 %v893_v44, %v891_v10  ;;  %v264_v14 = vmul.f32 %v945_v41, %v911_v2 }
  0x39   :  { %v252_v13 = vadd.f32 %v250_v48, %v248_v20  ;;  %v257_v22 = vadd.f32 %v255_v59, %v253_v51  ;;  %v258_v23 = vadd.f32 %v256_v60, %v254_v52  ;;  %v266_v35 = vmul.f32 %v242_v19, %v931_v33 }
  0x3a   :  { %v268_v36 = vmul.f32 %v913_v18, %v891_v10  ;;  %v265_v61 = vadd.f32 %v264_v14, %v263_v40  ;;  %v269_v46 = vmul.f32 %v963_v17, %v911_v2  ;;  %v273_v11 = vmul.f32 %v933_v34, %v891_v10 }
  0x3b   :  { %v271_v45 = vmul.f32 %v252_v13, %v931_v33  ;;  %v261_v12 = vadd.f32 %v259_v63, %v257_v22  ;;  %v262_v62 = vadd.f32 %v260_v21, %v258_v23  ;;  %v274_v24 = vmul.f32 %v232_v49, %v911_v2 }
  0x3c   :  { %v278_v0 = vmul.f32 %v943_v43, %v893_v44  ;;  %v267_v9 = vadd.f32 %v266_v35, %v265_v61  ;;  %v270_v42 = vadd.f32 %v269_v46, %v268_v36  ;;  %v279_v25 = vmul.f32 %v221_v1, %v945_v41 }
  0x3d   :  { %v281_v26 = vmul.f32 %v242_v19, %v231_v30  ;;  %v275_v5 = vadd.f32 %v274_v24, %v273_v11  ;;  %v276_v6 = vmul.f32 %v262_v62, %v931_v33  ;;  %v283_v7 = vmul.f32 %v943_v43, %v913_v18 }
  0x3e   :  { %v284_v10 = vmul.f32 %v963_v17, %v221_v1  ;;  %v272_v8 = vadd.f32 %v271_v45, %v270_v42  ;;  %v280_v27 = vadd.f32 %v279_v25, %v278_v0  ;;  %v286_v53 = vmul.f32 %v252_v13, %v231_v30 }
  0x3f   :  { %v288_v2 = vmul.f32 %v943_v43, %v933_v34  ;;  %v277_v28 = vadd.f32 %v276_v6, %v275_v5  ;;  %v289_v29 = vmul.f32 %v232_v49, %v221_v1  ;;  %v291_v57 = vmul.f32 %v262_v62, %v231_v30 }
  0x40   :  { %v285_v54 = vadd.f32 %v284_v10, %v283_v7  ;;  %v282_v58 = vadd.f32 %v281_v26, %v280_v27  ;;  %v293_v15 = vmul.f32 %v241_v38, %v893_v44  ;;  %v294_v33 = vmul.f32 %v251_v39, %v945_v41 }
  0x41   :  { %v296_v16 = vmul.f32 %v261_v12, %v242_v19  ;;  %v290_v32 = vadd.f32 %v289_v29, %v288_v2  ;;  %v298_v3 = vmul.f32 %v241_v38, %v913_v18  ;;  %v299_v50 = vmul.f32 %v251_v39, %v963_v17 }
  0x42   :  { %v287_v31 = vadd.f32 %v286_v53, %v285_v54  ;;  %v295_v37 = vadd.f32 %v294_v33, %v293_v15  ;;  %v301_v55 = vmul.f32 %v261_v12, %v252_v13  ;;  %v303_v43 = vmul.f32 %v241_v38, %v933_v34 }
  0x43   :  { %v304_v56 = vmul.f32 %v251_v39, %v232_v49  ;;  %v292_v47 = vadd.f32 %v291_v57, %v290_v32  ;;  %v300_v1 = vadd.f32 %v299_v50, %v298_v3  ;;  %v306_v30 = vmul.f32 %v262_v62, %v261_v12 }
  0x44   :  { %v309_v48 = vrot.slane %v267_v9, 4  ;;  %v297_v51 = vadd.f32 %v296_v16, %v295_v37  ;;  %v313_v52 = vrot.slane %v282_v58, 4  ;;  %v323_v41 = vrot.slane %v272_v8, 4 }
  0x45   :  { %v305_v44 = vadd.f32 %v304_v56, %v303_v43  ;;  %v302_v19 = vadd.f32 %v301_v55, %v300_v1  ;;  %v327_v20 = vrot.slane %v287_v31, 4  ;;  %v337_v59 = vrot.slane %v277_v28, 4 }
  0x46   :  { %v311_v4 = vmul.f32 %v309_v48, %v267_v9  ;;  %v315_v60 = vmul.f32 %v313_v52, %v272_v8  ;;  %v318_v17 = vrot.slane %v297_v51, 4  ;;  %v325_v63 = vmul.f32 %v323_v41, %v267_v9 }
  0x47   :  { %v307_v18 = vadd.f32 %v306_v30, %v305_v44  ;;  %v329_v21 = vmul.f32 %v327_v20, %v272_v8  ;;  %v332_v13 = vrot.slane %v302_v19, 4  ;;  %v339_v34 = vmul.f32 %v337_v59, %v267_v9 }
  0x48   :  { %v341_v49 = vrot.slane %v292_v47, 4  ;;  %v316_v38 = vadd.f32 %v315_v60, %v311_v4  ;;  %v320_v39 = vmul.f32 %v318_v17, %v277_v28  ;;  %v350_v14 = vmul.f32 %v309_v48, %v282_v58 }
  0x49   :  { %v346_v40 = vrot.slane %v307_v18, 4  ;;  %v330_v22 = vadd.f32 %v329_v21, %v325_v63  ;;  %v334_v23 = vmul.f32 %v332_v13, %v277_v28  ;;  %v351_v36 = vmul.f32 %v313_v52, %v287_v31 }
  0x4a   :  { %v343_v35 = vmul.f32 %v341_v49, %v272_v8  ;;  %v321_v61 = vadd.f32 %v320_v39, %v316_v38  ;;  %v353_v45 = vmul.f32 %v318_v17, %v292_v47  ;;  %v355_v11 = vmul.f32 %v323_v41, %v282_v58 }
  0x4b   :  { %v348_v46 = vmul.f32 %v346_v40, %v277_v28  ;;  %v335_v12 = vadd.f32 %v334_v23, %v330_v22  ;;  %v352_v24 = vadd.f32 %v351_v36, %v350_v14  ;;  %v356_v0 = vmul.f32 %v327_v20, %v287_v31 }
  0x4c   :  { %v344_v62 = vadd.f32 %v343_v35, %v339_v34  ;;  %v358_v42 = vmul.f32 %v332_v13, %v292_v47  ;;  %v360_v25 = vmul.f32 %v337_v59, %v282_v58  ;;  %v361_v9 = vmul.f32 %v341_v49, %v287_v31 }
  0x4d   :  { %v363_v26 = vmul.f32 %v346_v40, %v292_v47  ;;  %v354_v6 = vadd.f32 %v353_v45, %v352_v24  ;;  %v357_v7 = vadd.f32 %v356_v0, %v355_v11  ;;  %v365_v10 = vmul.f32 %v309_v48, %v297_v51 }
  0x4e   :  { %v349_v5 = vadd.f32 %v348_v46, %v344_v62  ;;  %v362_v27 = vadd.f32 %v361_v9, %v360_v25  ;;  %v366_v53 = vmul.f32 %v313_v52, %v302_v19  ;;  %v368_v8 = vmul.f32 %v318_v17, %v307_v18 }
  0x4f   :  { %v370_v2 = vmul.f32 %v323_v41, %v297_v51  ;;  %v359_v54 = vadd.f32 %v358_v42, %v357_v7  ;;  %v371_v28 = vmul.f32 %v327_v20, %v302_v19  ;;  %v373_v29 = vmul.f32 %v332_v13, %v307_v18 }
  0x50   :  { %v375_v57 = vmul.f32 %v337_v59, %v297_v51  ;;  %v364_v15 = vadd.f32 %v363_v26, %v362_v27  ;;  %v367_v33 = vadd.f32 %v366_v53, %v365_v10  ;;  %v376_v16 = vmul.f32 %v341_v49, %v302_v19 }
  0x51   :  { %v378_v32 = vmul.f32 %v346_v40, %v307_v18  ;;  %v372_v3 = vadd.f32 %v371_v28, %v370_v2  ;;  %v381_v58 = vrot.slane %v321_v61, 2  ;;  %v385_v31 = vrot.slane %v354_v6, 2 }
  0x52   :  { %v395_v50 = vrot.slane %v335_v12, 2  ;;  %v369_v37 = vadd.f32 %v368_v8, %v367_v33  ;;  %v377_v55 = vadd.f32 %v376_v16, %v375_v57  ;;  %v399_v43 = vrot.slane %v359_v54, 2 }
  0x53   :  { %v409_v56 = vrot.slane %v349_v5, 2  ;;  %v374_v47 = vadd.f32 %v373_v29, %v372_v3  ;;  %v383_v1 = vmul.f32 %v381_v58, %v321_v61  ;;  %v387_v30 = vmul.f32 %v385_v31, %v335_v12 }
  0x54   :  { %v397_v48 = vmul.f32 %v395_v50, %v321_v61  ;;  %v379_v44 = vadd.f32 %v378_v32, %v377_v55  ;;  %v390_v52 = vrot.slane %v369_v37, 2  ;;  %v401_v41 = vmul.f32 %v399_v43, %v335_v12 }
  0x55   :  { %v411_v51 = vmul.f32 %v409_v56, %v321_v61  ;;  %v388_v4 = vadd.f32 %v387_v30, %v383_v1  ;;  %v404_v20 = vrot.slane %v374_v47, 2  ;;  %v413_v19 = vrot.slane %v364_v15, 2 }
  0x56   :  { %v422_v59 = vmul.f32 %v381_v58, %v354_v6  ;;  %v392_v18 = vmul.f32 %v390_v52, %v349_v5  ;;  %v402_v60 = vadd.f32 %v401_v41, %v397_v48  ;;  %v418_v17 = vrot.slane %v379_v44, 2 }
  0x57   :  { %v423_v63 = vmul.f32 %v385_v31, %v359_v54  ;;  %v406_v21 = vmul.f32 %v404_v20, %v349_v5  ;;  %v415_v13 = vmul.f32 %v413_v19, %v335_v12  ;;  %v425_v34 = vmul.f32 %v390_v52, %v364_v15 }
  0x58   :  { %v427_v49 = vmul.f32 %v395_v50, %v354_v6  ;;  %v1024_v38 = vadd.f32 %v392_v18, %v388_v4  ;;  %v420_v39 = vmul.f32 %v418_v17, %v349_v5  ;;  %v428_v14 = vmul.f32 %v399_v43, %v359_v54 }
  0x59   :  { %v424_v40 = vadd.f32 %v423_v63, %v422_v59  ;;  %v1026_v22 = vadd.f32 %v406_v21, %v402_v60  ;;  %v416_v23 = vadd.f32 %v415_v13, %v411_v51  ;;  %v430_v35 = vmul.f32 %v404_v20, %v364_v15  ;;  %v1064_v60 = vld [vmem:[%s1229_s1] sm:$0x1] }
  0x5a   :  { %v432_v36 = vmul.f32 %v409_v56, %v354_v6  ;;  %v429_v46 = vadd.f32 %v428_v14, %v427_v49  ;;  %v433_v45 = vmul.f32 %v413_v19, %v359_v54  ;;  %v435_v11 = vmul.f32 %v418_v17, %v364_v15 }
  0x5b   :  { %v1028_v61 = vadd.f32 %v425_v34, %v424_v40  ;;  %v1030_v62 = vadd.f32 %v420_v39, %v416_v23  ;;  %v437_v12 = vmul.f32 %v381_v58, %v369_v37  ;;  %v438_v24 = vmul.f32 %v385_v31, %v374_v47  ;;  %v1081_v39 = vld [vmem:[%s1229_s1 + $0x2] sm:$0x1] }
  0x5c   :  { %v440_v0 = vmul.f32 %v390_v52, %v379_v44  ;;  %v1032_v42 = vadd.f32 %v430_v35, %v429_v46  ;;  %v434_v25 = vadd.f32 %v433_v45, %v432_v36  ;;  %v442_v9 = vmul.f32 %v395_v50, %v369_v37 }
  0x5d   :  { %v443_v26 = vmul.f32 %v399_v43, %v374_v47  ;;  %v439_v5 = vadd.f32 %v438_v24, %v437_v12  ;;  %v445_v7 = vmul.f32 %v404_v20, %v379_v44  ;;  %v447_v10 = vmul.f32 %v409_v56, %v369_v37 }
  0x5e   :  { %v448_v27 = vmul.f32 %v413_v19, %v374_v47  ;;  %v1034_v6 = vadd.f32 %v435_v11, %v434_v25  ;;  %v450_v8 = vmul.f32 %v418_v17, %v379_v44  ;;  %v453_v2 = vrot.slane %v1024_v38, 1  ;;  %v1069_v17 = vld [vmem:[%s1229_s1 + $0x1] sm:$0x1] }
  0x5f   :  { %v444_v53 = vadd.f32 %v443_v26, %v442_v9  ;;  %v1037_v54 = vadd.f32 %v440_v0, %v439_v5  ;;  %v457_v29 = vrot.slane %v1028_v61, 1  ;;  %v467_v57 = vrot.slane %v1026_v22, 1 }
  0x60   :  { %v449_v28 = vadd.f32 %v448_v27, %v447_v10  ;;  %v455_v33 = vmul.f32 %v453_v2, %v1024_v38  ;;  %v494_v16 = vmul.f32 %v453_v2, %v1028_v61  ;;  %v471_v32 = vrot.slane %v1032_v42, 1 }
  0x61   :  { %v1041_v15 = vadd.f32 %v445_v7, %v444_v53  ;;  %v459_v58 = vmul.f32 %v457_v29, %v1026_v22  ;;  %v462_v31 = vrot.slane %v1037_v54, 1  ;;  %v495_v50 = vmul.f32 %v457_v29, %v1032_v42 }
  0x62   :  { %v1046_v3 = vadd.f32 %v450_v8, %v449_v28  ;;  %v509_v37 = vmul.f32 %v453_v2, %v1037_v54  ;;  %v469_v43 = vmul.f32 %v467_v57, %v1024_v38  ;;  %v473_v56 = vmul.f32 %v471_v32, %v1026_v22 }
  0x63   :  { %v510_v55 = vmul.f32 %v457_v29, %v1041_v15  ;;  %v460_v47 = vadd.f32 %v459_v58, %v455_v33  ;;  %v464_v1 = vmul.f32 %v462_v31, %v1030_v62  ;;  %v496_v30 = vadd.f32 %v495_v50, %v494_v16  ;;  %v554_v16 = vld [vmem:[%s1229_s1 + $0x3] sm:$0x1] }
  0x64   :  { %v497_v48 = vmul.f32 %v462_v31, %v1034_v6  ;;  %v512_v52 = vmul.f32 %v462_v31, %v1046_v3  ;;  %v474_v41 = vadd.f32 %v473_v56, %v469_v43  ;;  %v476_v51 = vrot.slane %v1041_v15, 1  ;;  %v556_v31 = vld [vmem:[%s1229_s1 + $0x5] sm:$0x1] }
  0x65   :  { %v511_v44 = vadd.f32 %v510_v55, %v509_v37  ;;  %v465_v4 = vadd.f32 %v464_v1, %v460_v47  ;;  %v499_v19 = vmul.f32 %v467_v57, %v1028_v61  ;;  %v500_v59 = vmul.f32 %v471_v32, %v1032_v42  ;;  %v575_v47 = vld [vmem:[%s1229_s1 + $0x6] sm:$0x1]  ;;  %v576_v1 = vld [vmem:[%s1229_s1 + $0x7] sm:$0x1] }
  0x66   :  { %v498_v20 = vadd.f32 %v497_v48, %v496_v30  ;;  %v478_v63 = vmul.f32 %v476_v51, %v1030_v62  ;;  %v502_v21 = vmul.f32 %v476_v51, %v1034_v6  ;;  %v514_v13 = vmul.f32 %v467_v57, %v1037_v54 }
  0x67   :  { %v513_v18 = vadd.f32 %v512_v52, %v511_v44  ;;  %v1074_v34 = vround.rtne.f32 %v465_v4  ;;  %v501_v40 = vadd.f32 %v500_v59, %v499_v19  ;;  %v515_v14 = vmul.f32 %v471_v32, %v1041_v15  ;;  %v577_v19 = vld [vmem:[%s1229_s1 + $0x8] sm:$0x1] }
  0x68   :  { %v1076_v49 = vround.rtne.f32 %v498_v20  ;;  %v479_v35 = vadd.f32 %v478_v63, %v474_v41  ;;  %v517_v36 = vmul.f32 %v476_v51, %v1046_v3  ;;  %v481_v46 = vrot.slane %v1030_v62, 1 }
  0x69   :  { %v1084_v23 = vround.rtne.f32 %v513_v18  ;;  %v536_v45 = vmul.f32 %v1074_v34, %v1064_v60  ;;  %v503_v12 = vadd.f32 %v502_v21, %v501_v40  ;;  %v516_v24 = vadd.f32 %v515_v14, %v514_v13 }
  0x6a   :  { %v537_v11 = vmul.f32 %v1076_v49, %v1069_v17  ;;  %v1094_v25 = vround.rtne.f32 %v479_v35  ;;  %v483_v9 = vmul.f32 %v481_v46, %v1024_v38  ;;  %v485_v26 = vrot.slane %v1034_v6, 1 }
  0x6b   :  { %v539_v0 = vmul.f32 %v1084_v23, %v1081_v39  ;;  %v518_v7 = vadd.f32 %v517_v36, %v516_v24  ;;  %v1098_v10 = vround.rtne.f32 %v503_v12  ;;  %v490_v27 = vrot.slane %v1046_v3, 1 }
  0x6c   :  { %v538_v5 = vadd.f32 %v537_v11, %v536_v45  ;;  %v542_v53 = vmul.f32 %v1094_v25, %v1064_v60  ;;  %v487_v8 = vmul.f32 %v485_v26, %v1026_v22  ;;  %v504_v2 = vmul.f32 %v481_v46, %v1028_v61  ;;  %v555_v22 = vld [vmem:[%s1229_s1 + $0x4] sm:$0x1] }
  0x6d   :  { %v505_v28 = vmul.f32 %v485_v26, %v1032_v42  ;;  %v1106_v57 = vround.rtne.f32 %v518_v7  ;;  %v543_v38 = vmul.f32 %v1098_v10, %v1069_v17  ;;  %v492_v33 = vmul.f32 %v490_v27, %v1030_v62 }
  0x6e   :  { %v540_v29 = vadd.f32 %v539_v0, %v538_v5  ;;  %v488_v32 = vadd.f32 %v487_v8, %v483_v9  ;;  %v507_v42 = vmul.f32 %v490_v27, %v1034_v6  ;;  %v519_v58 = vmul.f32 %v481_v46, %v1037_v54 }
  0x6f   :  { %v506_v61 = vadd.f32 %v505_v28, %v504_v2  ;;  %v544_v62 = vadd.f32 %v543_v38, %v542_v53  ;;  %v545_v50 = vmul.f32 %v1106_v57, %v1081_v39  ;;  %v520_v37 = vmul.f32 %v485_v26, %v1041_v15 }
  0x70   :  { %541 = vst [vmem:[%s1230_s2] sm:$0x1] %v540_v29  ;;  %v522_v55 = vmul.f32 %v490_v27, %v1046_v3  ;;  %v493_v43 = vadd.f32 %v492_v33, %v488_v32  ;;  %v557_v54 = vmul.f32 %v1074_v34, %v554_v16  ;;  %v558_v56 = vmul.f32 %v1076_v49, %v555_v22 }
  0x71   :  { %v508_v6 = vadd.f32 %v507_v42, %v506_v61  ;;  %v546_v30 = vadd.f32 %v545_v50, %v544_v62  ;;  %v521_v48 = vadd.f32 %v520_v37, %v519_v58  ;;  %v560_v15 = vmul.f32 %v1084_v23, %v556_v31 }
  0x72   :  { %v563_v3 = vmul.f32 %v1094_v25, %v554_v16  ;;  %v666_v44 = vround.rtne.f32 %v493_v43  ;;  %v559_v41 = vadd.f32 %v558_v56, %v557_v54  ;;  %v564_v51 = vmul.f32 %v1098_v10, %v555_v22 }
  0x73   :  { %v669_v52 = vround.rtne.f32 %v508_v6  ;;  %547 = vst [vmem:[%s1230_s2 + $0x1] sm:$0x1] %v546_v30  ;;  %v523_v4 = vadd.f32 %v522_v55, %v521_v48  ;;  %v566_v20 = vmul.f32 %v1106_v57, %v556_v31  ;;  %v578_v59 = vmul.f32 %v1074_v34, %v575_v47 }
  0x74   :  { %v579_v18 = vmul.f32 %v1076_v49, %v576_v1  ;;  %v548_v63 = vmul.f32 %v666_v44, %v1064_v60  ;;  %v561_v13 = vadd.f32 %v560_v15, %v559_v41  ;;  %v565_v40 = vadd.f32 %v564_v51, %v563_v3 }
  0x75   :  { %v549_v21 = vmul.f32 %v669_v52, %v1069_v17  ;;  %v672_v14 = vround.rtne.f32 %v523_v4  ;;  %v569_v35 = vmul.f32 %v666_v44, %v554_v16  ;;  %v570_v36 = vmul.f32 %v669_v52, %v555_v22 }
  0x76   :  { %v580_v46 = vadd.f32 %v579_v18, %v578_v59  ;;  %562 = vst [vmem:[%s1230_s2 + $0x3] sm:$0x1] %v561_v13  ;;  %v567_v11 = vadd.f32 %v566_v20, %v565_v40  ;;  %v581_v12 = vmul.f32 %v1084_v23, %v577_v19  ;;  %v584_v24 = vmul.f32 %v1094_v25, %v575_v47 }
  0x77   :  { %v550_v45 = vadd.f32 %v549_v21, %v548_v63  ;;  %v551_v60 = vmul.f32 %v672_v14, %v1081_v39  ;;  %v571_v0 = vadd.f32 %v570_v36, %v569_v35  ;;  %v572_v17 = vmul.f32 %v672_v14, %v556_v31 }
  0x78   :  { %v585_v9 = vmul.f32 %v1098_v10, %v576_v1  ;;  %568 = vst [vmem:[%s1230_s2 + $0x4] sm:$0x1] %v567_v11  ;;  %v582_v26 = vadd.f32 %v581_v12, %v580_v46  ;;  %v587_v5 = vmul.f32 %v1106_v57, %v577_v19  ;;  %v590_v7 = vmul.f32 %v666_v44, %v575_v47 }
  0x79   :  { %v591_v27 = vmul.f32 %v669_v52, %v576_v1  ;;  %v552_v53 = vadd.f32 %v551_v60, %v550_v45  ;;  %v573_v8 = vadd.f32 %v572_v17, %v571_v0  ;;  %v593_v28 = vmul.f32 %v672_v14, %v577_v19 }
  0x7a   :  { %v586_v2 = vadd.f32 %v585_v9, %v584_v24  ;;  %583 = vst [vmem:[%s1230_s2 + $0x6] sm:$0x1] %v582_v26  ;;  %v596_v29 = vmul.f32 %v672_v14, %v1098_v10  ;;  %v597_v38 = vmul.f32 %v1106_v57, %v669_v52  ;;  %v599_v33 = vmul.f32 %v1106_v57, %v666_v44 }
  0x7b   :  { %v592_v39 = vadd.f32 %v591_v27, %v590_v7  ;;  %553 = vst [vmem:[%s1230_s2 + $0x2] sm:$0x1] %v552_v53  ;;  %574 = vst [vmem:[%s1230_s2 + $0x5] sm:$0x1] %v573_v8  ;;  %v600_v22 = vmul.f32 %v672_v14, %v1094_v25  ;;  %v602_v32 = vmul.f32 %v669_v52, %v1094_v25 }
  0x7c   :  { %v588_v16 = vadd.f32 %v587_v5, %v586_v2  ;;  %v603_v61 = vmul.f32 %v1098_v10, %v666_v44  ;;  %v598_v58 = vsub.f32 %v596_v29, %v597_v38  ;;  %v605_v31 = vmul.f32 %v1084_v23, %v669_v52 }
  0x7d   :  { %v594_v42 = vadd.f32 %v593_v28, %v592_v39  ;;  %v606_v62 = vmul.f32 %v672_v14, %v1076_v49  ;;  %v601_v50 = vsub.f32 %v599_v33, %v600_v22  ;;  %v608_v55 = vmul.f32 %v672_v14, %v1074_v34 }
  0x7e   :  { %589 = vst [vmem:[%s1230_s2 + $0x7] sm:$0x1] %v588_v16  ;;  %v604_v37 = vsub.f32 %v602_v32, %v603_v61  ;;  %v609_v43 = vmul.f32 %v1084_v23, %v666_v44  ;;  %623 = vst [vmem:[%s1231_s3] sm:$0x1] %v598_v58  ;;  %v611_v54 = vmul.f32 %v1076_v49, %v666_v44 }
  0x7f   :  { %595 = vst [vmem:[%s1230_s2 + $0x8] sm:$0x1] %v594_v42  ;;  %v607_v6 = vsub.f32 %v605_v31, %v606_v62  ;;  %v612_v56 = vmul.f32 %v669_v52, %v1074_v34  ;;  %v614_v47 = vmul.f32 %v1106_v57, %v1076_v49  ;;  %624 = vst [vmem:[%s1231_s3 + $0x1] sm:$0x1] %v601_v50 }
  0x80   :  { %625 = vst [vmem:[%s1231_s3 + $0x2] sm:$0x1] %v604_v37  ;;  %v610_v1 = vsub.f32 %v608_v55, %v609_v43  ;;  %v615_v30 = vmul.f32 %v1084_v23, %v1098_v10  ;;  %v617_v48 = vmul.f32 %v1084_v23, %v1094_v25  ;;  %v618_v15 = vmul.f32 %v1106_v57, %v1074_v34 }
  0x81   :  { %626 = vst [vmem:[%s1231_s3 + $0x3] sm:$0x1] %v607_v6  ;;  %v613_v3 = vsub.f32 %v611_v54, %v612_v56  ;;  %v620_v44 = vmul.f32 %v1098_v10, %v1074_v34  ;;  %v621_v52 = vmul.f32 %v1076_v49, %v1094_v25 }
  0x82   :  { %627 = vst [vmem:[%s1231_s3 + $0x4] sm:$0x1] %v610_v1  ;;  %v616_v41 = vsub.f32 %v614_v47, %v615_v30  ;;  %v619_v23 = vsub.f32 %v617_v48, %v618_v15 }
  0x83   :  { %628 = vst [vmem:[%s1231_s3 + $0x5] sm:$0x1] %v613_v3  ;;  %v622_v57 = vsub.f32 %v620_v44, %v621_v52 }
  0x84   :  { %629 = vst [vmem:[%s1231_s3 + $0x6] sm:$0x1] %v616_v41  ;;  %630 = vst [vmem:[%s1231_s3 + $0x7] sm:$0x1] %v619_v23 }
  0x85   :  { %631 = vst [vmem:[%s1231_s3 + $0x8] sm:$0x1] %v622_v57 }

</bundles_post_ra>
